<compile_context>
chip_gen: v7x
topology: tpu7x:2x2x1
jax: 0.10.0
libtpu: 0.0.40
codegen_flags: <defaults>
</compile_context>

<pallas_src>
import functools

import jax
import jax.numpy as jnp
import numpy as np
from jax.experimental import pallas as pl
from jax.experimental.pallas import tpu as pltpu


def _upsample_fused_kernel(x_ref, w1_ref, b1_ref, mask_ref, w2_ref, b2_ref,
                           o_ref, *, ksize, cin, cmid, cout, nbatch, wp,
                           l_mid, l_acc):
    """Fused deconv+ReLU+conv+ReLU, whole batch in one invocation.

    Layout: batch is folded onto sublanes (rows = b*channels + c); the padded
    (hp, wp) spatial frame is flattened onto lanes.

    x_ref   : (cin, nbatch*cmid, l_in)   per-input-channel tiles, pre-replicated
              across the cmid deconv output channels; zero-stuffed, padded and
              left-shifted by (k//2)*(wp+1) in the wrapper.
    w1_ref  : (cin*k*k, nbatch*cmid, l_mid)  pre-broadcast flipped deconv taps.
    b1_ref  : (nbatch*cmid, l_mid)           pre-broadcast deconv bias.
    mask_ref: (nbatch*cmid, l_mid)  1.0 on interior frame cells, 0.0 on the
              border/pad cells (this IS conv2's zero padding).
    w2_ref  : (cout*k*k, nbatch*cmid, l_acc) pre-broadcast conv taps.
    b2_ref  : (nbatch*cout, l_acc)           pre-broadcast conv bias.
    o_ref   : (nbatch*cout, l_acc)           flattened (out_h, wp) output.
    """
    k2 = ksize * ksize

    # ---- stage 1: ConvTranspose2d as a stride-1 correlation over the frame ----
    # One independent accumulator chain per input channel; tree-summed at the end.
    partial = []
    for ci in range(cin):
        xc = x_ref[ci]                               # (nb*cmid, l_in) plain vld
        a = None
        for kh in range(ksize):
            for kw in range(ksize):
                d = kh * wp + kw
                t = ci * k2 + kh * ksize + kw
                p = w1_ref[t] * xc[:, d:d + l_mid]   # vld * static lane shift
                a = p if a is None else a + p
        partial.append(a)
    while len(partial) > 1:                          # tree reduction over ci
        nxt = [partial[i] + partial[i + 1] for i in range(0, len(partial) - 1, 2)]
        if len(partial) % 2:
            nxt.append(partial[-1])
        partial = nxt
    acc1 = partial[0]

    # bias + ReLU; mask zeroes the frame border == conv2's zero padding.
    y1 = jnp.maximum(acc1 + b1_ref[...], 0.0) * mask_ref[...]   # (nb*cmid, l_mid)

    # ---- stage 2: 3x3 'same' Conv2d; per-output-channel accumulators over full
    # 8-sublane tiles; the window slice is shared across output channels. ------
    acc2 = [None] * cout
    for kh in range(ksize):
        for kw in range(ksize):
            d = kh * wp + kw
            win = y1[:, d:d + l_acc]                 # (nb*cmid, l_acc)
            for co in range(cout):
                t = co * k2 + kh * ksize + kw
                p = w2_ref[t] * win
                acc2[co] = p if acc2[co] is None else acc2[co] + p

    # reduce over input channels inside each batch group, assemble output rows
    # (b*cout + co), and do one dense store of the whole output block.
    rows = []
    for b in range(nbatch):
        for co in range(cout):
            s = acc2[co][b * cmid:b * cmid + 1, :]
            for ci in range(1, cmid):
                s = s + acc2[co][b * cmid + ci:b * cmid + ci + 1, :]
            rows.append(s)
    out = jnp.concatenate(rows, axis=0)              # (nbatch*cout, l_acc)
    o_ref[...] = jnp.maximum(out + b2_ref[...], 0.0)


def upsample_forward(x_nchw, output_size, params, kernel_size=3, stride=2):
    """Pallas equivalent of UpSample.forward(x, output_size). NCHW in/out."""
    k, s, p = kernel_size, stride, 1
    n, c, h, w = x_nchw.shape
    cin = cmid = c
    cout = params["conv_w"].shape[0]
    out_h, out_w = int(output_size[-2]), int(output_size[-1])

    op_h = out_h - ((h - 1) * s - 2 * p + k)
    op_w = out_w - ((w - 1) * s - 2 * p + k)
    assert 0 <= op_h < s and 0 <= op_w < s, "invalid output_size"

    pad = k - 1 - p                                  # deconv pad (top/left)
    hp, wp_ = out_h + (k - 1), out_w + (k - 1)       # padded frame grid
    off = (k // 2) * (wp_ + 1)                       # frame origin shift
    l_frame = hp * wp_
    l_mid = l_frame + (k - 1)                        # stage-1 frame width (+tail)
    d_max = (k - 1) * wp_ + (k - 1)
    l_in = l_mid + d_max                             # shifted input width
    l_acc = out_h * wp_                              # flattened output width

    # ---- input prep (tiny, fused by jit into one XLA program): zero-stuff, pad,
    # flatten, left-shift by `off`, and pre-replicate each input channel across
    # the cmid sublane rows so the kernel never does sublane broadcasts. --------
    # TODO(synk): polyphase deconv read for production resolutions (~4x fewer
    #             stage-1 MACs and 4x less input traffic).
    x = x_nchw.astype(jnp.float32)
    hs, ws = (h - 1) * s + 1, (w - 1) * s + 1
    stuffed = jnp.zeros((n, c, hs, ws), jnp.float32).at[:, :, ::s, ::s].set(x)
    x1p = jnp.pad(stuffed, ((0, 0), (0, 0),
                            (pad, pad + op_h), (pad, pad + op_w)))   # (n,c,hp,wp_)
    x1f = x1p.reshape(n, c, l_frame)
    x1f = jnp.pad(x1f, ((0, 0), (0, 0), (off, l_in - off - l_frame)))
    x_rep = jnp.transpose(x1f, (1, 0, 2))                            # (c, n, l_in)
    x_rep = jnp.broadcast_to(x_rep[:, :, None, :], (c, n, cmid, l_in))
    x_rep = x_rep.reshape(c, n * cmid, l_in)

    # ---- weight / bias / mask prep, pre-broadcast lane-dense (hoisted) -------
    # deconv weight (cin, cmid, kh, kw): flip spatially; row t = ci*k*k+kh*k+kw
    wt = params["deconv_w"][:, :, ::-1, ::-1].astype(jnp.float32)
    w1 = jnp.transpose(wt, (0, 2, 3, 1)).reshape(cin * k * k, cmid)
    w1 = jnp.tile(w1[:, None, :], (1, n, 1)).reshape(cin * k * k, n * cmid)
    w1b = jnp.broadcast_to(w1[:, :, None], (cin * k * k, n * cmid, l_mid))

    # conv weight (cout, cmid, kh, kw): row t = co*k*k+kh*k+kw, columns = ci
    w2 = jnp.transpose(params["conv_w"].astype(jnp.float32),
                       (0, 2, 3, 1)).reshape(cout * k * k, cmid)
    w2 = jnp.tile(w2[:, None, :], (1, n, 1)).reshape(cout * k * k, n * cmid)
    w2b = jnp.broadcast_to(w2[:, :, None], (cout * k * k, n * cmid, l_acc))

    b1 = jnp.tile(params["deconv_b"].astype(jnp.float32)[None, :],
                  (n, 1)).reshape(n * cmid)
    b1b = jnp.broadcast_to(b1[:, None], (n * cmid, l_mid))
    b2 = jnp.tile(params["conv_b"].astype(jnp.float32)[None, :],
                  (n, 1)).reshape(n * cout)
    b2b = jnp.broadcast_to(b2[:, None], (n * cout, l_acc))

    # interior-of-frame mask: rows 1..out_h, cols 1..out_w carry real data;
    # everything else (border, row-wrap pad columns, tail) is zeroed.
    idx = np.arange(l_mid, dtype=np.int64)
    r2, c2 = idx // wp_, idx % wp_
    m = ((r2 >= 1) & (r2 <= out_h) & (c2 >= 1) & (c2 <= out_w)).astype(np.float32)
    maskb = jnp.asarray(np.broadcast_to(m[None, :], (n * cmid, l_mid)).copy())

    kern = functools.partial(_upsample_fused_kernel, ksize=k, cin=cin, cmid=cmid,
                             cout=cout, nbatch=n, wp=wp_, l_mid=l_mid, l_acc=l_acc)
    out_flat = pl.pallas_call(
        kern,
        out_shape=jax.ShapeDtypeStruct((n * cout, l_acc), jnp.float32),
        grid=(1,),                                    # single fused invocation
        in_specs=[
            pl.BlockSpec((cin, n * cmid, l_in), lambda i: (0, 0, 0)),
            pl.BlockSpec((cin * k * k, n * cmid, l_mid), lambda i: (0, 0, 0)),
            pl.BlockSpec((n * cmid, l_mid), lambda i: (0, 0)),
            pl.BlockSpec((n * cmid, l_mid), lambda i: (0, 0)),
            pl.BlockSpec((cout * k * k, n * cmid, l_acc), lambda i: (0, 0, 0)),
            pl.BlockSpec((n * cout, l_acc), lambda i: (0, 0)),
        ],
        out_specs=pl.BlockSpec((n * cout, l_acc), lambda i: (0, 0)),
        compiler_params=pltpu.CompilerParams(
            dimension_semantics=("arbitrary",),
            vmem_limit_bytes=32 * 1024 * 1024),
    )(x_rep, w1b, b1b, maskb, w2b, b2b)

    # free reshape + tiny column slice; already NCHW ordering -> no transpose
    out = out_flat.reshape(n, cout, out_h, wp_)[:, :, :, :out_w]
    return out


def reference_forward(x, output_size, params, kernel_size=3, stride=2):
    """Pure-JAX (lax) reference mirroring the PyTorch semantics."""
    k, s, p = kernel_size, stride, 1
    n, c, h, w = x.shape
    out_h, out_w = int(output_size[-2]), int(output_size[-1])
    op_h = out_h - ((h - 1) * s - 2 * p + k)
    op_w = out_w - ((w - 1) * s - 2 * p + k)

    wt = params["deconv_w"][:, :, ::-1, ::-1]
    wt = jnp.transpose(wt, (1, 0, 2, 3))  # (Cout, Cin, kh, kw)
    y = jax.lax.conv_general_dilated(
        x, wt, window_strides=(1, 1),
        padding=((k - 1 - p, k - 1 - p + op_h), (k - 1 - p, k - 1 - p + op_w)),
        lhs_dilation=(s, s),
        dimension_numbers=("NCHW", "OIHW", "NCHW"),
        precision=jax.lax.Precision.HIGHEST)
    y = jax.nn.relu(y + params["deconv_b"][None, :, None, None])

    z = jax.lax.conv_general_dilated(
        y, params["conv_w"], window_strides=(1, 1),
        padding=((1, 1), (1, 1)),
        dimension_numbers=("NCHW", "OIHW", "NCHW"),
        precision=jax.lax.Precision.HIGHEST)
    z = jax.nn.relu(z + params["conv_b"][None, :, None, None])
    return z


if __name__ == "__main__":
    in_channels = 4
    kernel_size = 3
    stride = 2
    N, H, W = 2, 8, 8

    key = jax.random.PRNGKey(0)
    k1, k2, k3, k4, k5 = jax.random.split(key, 5)
    params = {
        "deconv_w": 0.1 * jax.random.normal(
            k1, (in_channels, in_channels, kernel_size, kernel_size), jnp.float32),
        "deconv_b": 0.1 * jax.random.normal(k2, (in_channels,), jnp.float32),
        "conv_w": 0.1 * jax.random.normal(
            k3, (in_channels // stride, in_channels, kernel_size, kernel_size),
            jnp.float32),
        "conv_b": 0.1 * jax.random.normal(k4, (in_channels // stride,), jnp.float32),
    }
    x = jax.random.normal(k5, (N, in_channels, H, W), jnp.float32)
    output_size = (2 * H, 2 * W)  # standard "double the spatial size" target

    # jit the wrapper so the tiny prep ops fuse into one XLA program around the
    # single fused Pallas call (output_size / params are static closures).
    fwd = jax.jit(lambda xx: upsample_forward(xx, output_size, params,
                                              kernel_size=kernel_size,
                                              stride=stride))
    out = jax.block_until_ready(fwd(x))

    ref = reference_forward(x, output_size, params,
                            kernel_size=kernel_size, stride=stride)
    np.testing.assert_allclose(np.asarray(out), np.asarray(ref),
                               atol=1e-5, rtol=1e-5)
    assert out.shape == (N, in_channels // stride, output_size[0], output_size[1])
    print("KERNEL_OK")
</pallas_src>

<mosaic_0001>
module attributes {stable_mosaic.version = 11 : i64} {
  func.func @_upsample_fused_kernel(%arg0: i32, %arg1: memref<4x8x364xf32, #tpu.memory_space<vmem>>, %arg2: memref<36x8x326xf32, #tpu.memory_space<vmem>>, %arg3: memref<8x326xf32, #tpu.memory_space<vmem>>, %arg4: memref<8x326xf32, #tpu.memory_space<vmem>>, %arg5: memref<18x8x288xf32, #tpu.memory_space<vmem>>, %arg6: memref<4x288xf32, #tpu.memory_space<vmem>>, %arg7: memref<4x288xf32, #tpu.memory_space<vmem>>) attributes {dimension_semantics = [#tpu.dimension_semantics<arbitrary>], iteration_bounds = array<i64: 1>, scalar_prefetch = 0 : i64, scratch_operands = 0 : i64, tpu.core_type = #tpu.core_type<tc>, window_params = [{pipeline_mode = #tpu.pipeline_mode<synchronous>, transform_indices = @transform_0, window_bounds = array<i64: 4, 8, 364>}, {pipeline_mode = #tpu.pipeline_mode<synchronous>, transform_indices = @transform_1, window_bounds = array<i64: 36, 8, 326>}, {pipeline_mode = #tpu.pipeline_mode<synchronous>, transform_indices = @transform_2, window_bounds = array<i64: 8, 326>}, {pipeline_mode = #tpu.pipeline_mode<synchronous>, transform_indices = @transform_3, window_bounds = array<i64: 8, 326>}, {pipeline_mode = #tpu.pipeline_mode<synchronous>, transform_indices = @transform_4, window_bounds = array<i64: 18, 8, 288>}, {pipeline_mode = #tpu.pipeline_mode<synchronous>, transform_indices = @transform_5, window_bounds = array<i64: 4, 288>}, {pipeline_mode = #tpu.pipeline_mode<synchronous>, transform_indices = @transform_6, window_bounds = array<i64: 4, 288>}]} {
    %c0 = arith.constant 0 : index
    %c0_0 = arith.constant 0 : index
    %c0_1 = arith.constant 0 : index
    %0 = vector.load %arg1[%c0, %c0_0, %c0_1] : memref<4x8x364xf32, #tpu.memory_space<vmem>>, vector<1x8x364xf32>
    %1 = vector.shape_cast %0 : vector<1x8x364xf32> to vector<8x364xf32>
    %c0_2 = arith.constant 0 : index
    %c0_3 = arith.constant 0 : index
    %c0_4 = arith.constant 0 : index
    %2 = vector.load %arg2[%c0_2, %c0_3, %c0_4] : memref<36x8x326xf32, #tpu.memory_space<vmem>>, vector<1x8x326xf32>
    %3 = vector.shape_cast %2 : vector<1x8x326xf32> to vector<8x326xf32>
    %4 = vector.extract_strided_slice %1 {offsets = [0, 0], sizes = [8, 326], strides = [1, 1]} : vector<8x364xf32> to vector<8x326xf32>
    %5 = arith.mulf %3, %4 : vector<8x326xf32>
    %c1 = arith.constant 1 : index
    %c0_5 = arith.constant 0 : index
    %c0_6 = arith.constant 0 : index
    %6 = vector.load %arg2[%c1, %c0_5, %c0_6] : memref<36x8x326xf32, #tpu.memory_space<vmem>>, vector<1x8x326xf32>
    %7 = vector.shape_cast %6 : vector<1x8x326xf32> to vector<8x326xf32>
    %8 = vector.extract_strided_slice %1 {offsets = [0, 1], sizes = [8, 326], strides = [1, 1]} : vector<8x364xf32> to vector<8x326xf32>
    %9 = arith.mulf %7, %8 : vector<8x326xf32>
    %10 = arith.addf %5, %9 : vector<8x326xf32>
    %c2 = arith.constant 2 : index
    %c0_7 = arith.constant 0 : index
    %c0_8 = arith.constant 0 : index
    %11 = vector.load %arg2[%c2, %c0_7, %c0_8] : memref<36x8x326xf32, #tpu.memory_space<vmem>>, vector<1x8x326xf32>
    %12 = vector.shape_cast %11 : vector<1x8x326xf32> to vector<8x326xf32>
    %13 = vector.extract_strided_slice %1 {offsets = [0, 2], sizes = [8, 326], strides = [1, 1]} : vector<8x364xf32> to vector<8x326xf32>
    %14 = arith.mulf %12, %13 : vector<8x326xf32>
    %15 = arith.addf %10, %14 : vector<8x326xf32>
    %c3 = arith.constant 3 : index
    %c0_9 = arith.constant 0 : index
    %c0_10 = arith.constant 0 : index
    %16 = vector.load %arg2[%c3, %c0_9, %c0_10] : memref<36x8x326xf32, #tpu.memory_space<vmem>>, vector<1x8x326xf32>
    %17 = vector.shape_cast %16 : vector<1x8x326xf32> to vector<8x326xf32>
    %18 = vector.extract_strided_slice %1 {offsets = [0, 18], sizes = [8, 326], strides = [1, 1]} : vector<8x364xf32> to vector<8x326xf32>
    %19 = arith.mulf %17, %18 : vector<8x326xf32>
    %20 = arith.addf %15, %19 : vector<8x326xf32>
    %c4 = arith.constant 4 : index
    %c0_11 = arith.constant 0 : index
    %c0_12 = arith.constant 0 : index
    %21 = vector.load %arg2[%c4, %c0_11, %c0_12] : memref<36x8x326xf32, #tpu.memory_space<vmem>>, vector<1x8x326xf32>
    %22 = vector.shape_cast %21 : vector<1x8x326xf32> to vector<8x326xf32>
    %23 = vector.extract_strided_slice %1 {offsets = [0, 19], sizes = [8, 326], strides = [1, 1]} : vector<8x364xf32> to vector<8x326xf32>
    %24 = arith.mulf %22, %23 : vector<8x326xf32>
    %25 = arith.addf %20, %24 : vector<8x326xf32>
    %c5 = arith.constant 5 : index
    %c0_13 = arith.constant 0 : index
    %c0_14 = arith.constant 0 : index
    %26 = vector.load %arg2[%c5, %c0_13, %c0_14] : memref<36x8x326xf32, #tpu.memory_space<vmem>>, vector<1x8x326xf32>
    %27 = vector.shape_cast %26 : vector<1x8x326xf32> to vector<8x326xf32>
    %28 = vector.extract_strided_slice %1 {offsets = [0, 20], sizes = [8, 326], strides = [1, 1]} : vector<8x364xf32> to vector<8x326xf32>
    %29 = arith.mulf %27, %28 : vector<8x326xf32>
    %30 = arith.addf %25, %29 : vector<8x326xf32>
    %c6 = arith.constant 6 : index
    %c0_15 = arith.constant 0 : index
    %c0_16 = arith.constant 0 : index
    %31 = vector.load %arg2[%c6, %c0_15, %c0_16] : memref<36x8x326xf32, #tpu.memory_space<vmem>>, vector<1x8x326xf32>
    %32 = vector.shape_cast %31 : vector<1x8x326xf32> to vector<8x326xf32>
    %33 = vector.extract_strided_slice %1 {offsets = [0, 36], sizes = [8, 326], strides = [1, 1]} : vector<8x364xf32> to vector<8x326xf32>
    %34 = arith.mulf %32, %33 : vector<8x326xf32>
    %35 = arith.addf %30, %34 : vector<8x326xf32>
    %c7 = arith.constant 7 : index
    %c0_17 = arith.constant 0 : index
    %c0_18 = arith.constant 0 : index
    %36 = vector.load %arg2[%c7, %c0_17, %c0_18] : memref<36x8x326xf32, #tpu.memory_space<vmem>>, vector<1x8x326xf32>
    %37 = vector.shape_cast %36 : vector<1x8x326xf32> to vector<8x326xf32>
    %38 = vector.extract_strided_slice %1 {offsets = [0, 37], sizes = [8, 326], strides = [1, 1]} : vector<8x364xf32> to vector<8x326xf32>
    %39 = arith.mulf %37, %38 : vector<8x326xf32>
    %40 = arith.addf %35, %39 : vector<8x326xf32>
    %c8 = arith.constant 8 : index
    %c0_19 = arith.constant 0 : index
    %c0_20 = arith.constant 0 : index
    %41 = vector.load %arg2[%c8, %c0_19, %c0_20] : memref<36x8x326xf32, #tpu.memory_space<vmem>>, vector<1x8x326xf32>
    %42 = vector.shape_cast %41 : vector<1x8x326xf32> to vector<8x326xf32>
    %43 = vector.extract_strided_slice %1 {offsets = [0, 38], sizes = [8, 326], strides = [1, 1]} : vector<8x364xf32> to vector<8x326xf32>
    %44 = arith.mulf %42, %43 : vector<8x326xf32>
    %45 = arith.addf %40, %44 : vector<8x326xf32>
    %c1_21 = arith.constant 1 : index
    %c0_22 = arith.constant 0 : index
    %c0_23 = arith.constant 0 : index
    %46 = vector.load %arg1[%c1_21, %c0_22, %c0_23] : memref<4x8x364xf32, #tpu.memory_space<vmem>>, vector<1x8x364xf32>
    %47 = vector.shape_cast %46 : vector<1x8x364xf32> to vector<8x364xf32>
    %c9 = arith.constant 9 : index
    %c0_24 = arith.constant 0 : index
    %c0_25 = arith.constant 0 : index
    %48 = vector.load %arg2[%c9, %c0_24, %c0_25] : memref<36x8x326xf32, #tpu.memory_space<vmem>>, vector<1x8x326xf32>
    %49 = vector.shape_cast %48 : vector<1x8x326xf32> to vector<8x326xf32>
    %50 = vector.extract_strided_slice %47 {offsets = [0, 0], sizes = [8, 326], strides = [1, 1]} : vector<8x364xf32> to vector<8x326xf32>
    %51 = arith.mulf %49, %50 : vector<8x326xf32>
    %c10 = arith.constant 10 : index
    %c0_26 = arith.constant 0 : index
    %c0_27 = arith.constant 0 : index
    %52 = vector.load %arg2[%c10, %c0_26, %c0_27] : memref<36x8x326xf32, #tpu.memory_space<vmem>>, vector<1x8x326xf32>
    %53 = vector.shape_cast %52 : vector<1x8x326xf32> to vector<8x326xf32>
    %54 = vector.extract_strided_slice %47 {offsets = [0, 1], sizes = [8, 326], strides = [1, 1]} : vector<8x364xf32> to vector<8x326xf32>
    %55 = arith.mulf %53, %54 : vector<8x326xf32>
    %56 = arith.addf %51, %55 : vector<8x326xf32>
    %c11 = arith.constant 11 : index
    %c0_28 = arith.constant 0 : index
    %c0_29 = arith.constant 0 : index
    %57 = vector.load %arg2[%c11, %c0_28, %c0_29] : memref<36x8x326xf32, #tpu.memory_space<vmem>>, vector<1x8x326xf32>
    %58 = vector.shape_cast %57 : vector<1x8x326xf32> to vector<8x326xf32>
    %59 = vector.extract_strided_slice %47 {offsets = [0, 2], sizes = [8, 326], strides = [1, 1]} : vector<8x364xf32> to vector<8x326xf32>
    %60 = arith.mulf %58, %59 : vector<8x326xf32>
    %61 = arith.addf %56, %60 : vector<8x326xf32>
    %c12 = arith.constant 12 : index
    %c0_30 = arith.constant 0 : index
    %c0_31 = arith.constant 0 : index
    %62 = vector.load %arg2[%c12, %c0_30, %c0_31] : memref<36x8x326xf32, #tpu.memory_space<vmem>>, vector<1x8x326xf32>
    %63 = vector.shape_cast %62 : vector<1x8x326xf32> to vector<8x326xf32>
    %64 = vector.extract_strided_slice %47 {offsets = [0, 18], sizes = [8, 326], strides = [1, 1]} : vector<8x364xf32> to vector<8x326xf32>
    %65 = arith.mulf %63, %64 : vector<8x326xf32>
    %66 = arith.addf %61, %65 : vector<8x326xf32>
    %c13 = arith.constant 13 : index
    %c0_32 = arith.constant 0 : index
    %c0_33 = arith.constant 0 : index
    %67 = vector.load %arg2[%c13, %c0_32, %c0_33] : memref<36x8x326xf32, #tpu.memory_space<vmem>>, vector<1x8x326xf32>
    %68 = vector.shape_cast %67 : vector<1x8x326xf32> to vector<8x326xf32>
    %69 = vector.extract_strided_slice %47 {offsets = [0, 19], sizes = [8, 326], strides = [1, 1]} : vector<8x364xf32> to vector<8x326xf32>
    %70 = arith.mulf %68, %69 : vector<8x326xf32>
    %71 = arith.addf %66, %70 : vector<8x326xf32>
    %c14 = arith.constant 14 : index
    %c0_34 = arith.constant 0 : index
    %c0_35 = arith.constant 0 : index
    %72 = vector.load %arg2[%c14, %c0_34, %c0_35] : memref<36x8x326xf32, #tpu.memory_space<vmem>>, vector<1x8x326xf32>
    %73 = vector.shape_cast %72 : vector<1x8x326xf32> to vector<8x326xf32>
    %74 = vector.extract_strided_slice %47 {offsets = [0, 20], sizes = [8, 326], strides = [1, 1]} : vector<8x364xf32> to vector<8x326xf32>
    %75 = arith.mulf %73, %74 : vector<8x326xf32>
    %76 = arith.addf %71, %75 : vector<8x326xf32>
    %c15 = arith.constant 15 : index
    %c0_36 = arith.constant 0 : index
    %c0_37 = arith.constant 0 : index
    %77 = vector.load %arg2[%c15, %c0_36, %c0_37] : memref<36x8x326xf32, #tpu.memory_space<vmem>>, vector<1x8x326xf32>
    %78 = vector.shape_cast %77 : vector<1x8x326xf32> to vector<8x326xf32>
    %79 = vector.extract_strided_slice %47 {offsets = [0, 36], sizes = [8, 326], strides = [1, 1]} : vector<8x364xf32> to vector<8x326xf32>
    %80 = arith.mulf %78, %79 : vector<8x326xf32>
    %81 = arith.addf %76, %80 : vector<8x326xf32>
    %c16 = arith.constant 16 : index
    %c0_38 = arith.constant 0 : index
    %c0_39 = arith.constant 0 : index
    %82 = vector.load %arg2[%c16, %c0_38, %c0_39] : memref<36x8x326xf32, #tpu.memory_space<vmem>>, vector<1x8x326xf32>
    %83 = vector.shape_cast %82 : vector<1x8x326xf32> to vector<8x326xf32>
    %84 = vector.extract_strided_slice %47 {offsets = [0, 37], sizes = [8, 326], strides = [1, 1]} : vector<8x364xf32> to vector<8x326xf32>
    %85 = arith.mulf %83, %84 : vector<8x326xf32>
    %86 = arith.addf %81, %85 : vector<8x326xf32>
    %c17 = arith.constant 17 : index
    %c0_40 = arith.constant 0 : index
    %c0_41 = arith.constant 0 : index
    %87 = vector.load %arg2[%c17, %c0_40, %c0_41] : memref<36x8x326xf32, #tpu.memory_space<vmem>>, vector<1x8x326xf32>
    %88 = vector.shape_cast %87 : vector<1x8x326xf32> to vector<8x326xf32>
    %89 = vector.extract_strided_slice %47 {offsets = [0, 38], sizes = [8, 326], strides = [1, 1]} : vector<8x364xf32> to vector<8x326xf32>
    %90 = arith.mulf %88, %89 : vector<8x326xf32>
    %91 = arith.addf %86, %90 : vector<8x326xf32>
    %c2_42 = arith.constant 2 : index
    %c0_43 = arith.constant 0 : index
    %c0_44 = arith.constant 0 : index
    %92 = vector.load %arg1[%c2_42, %c0_43, %c0_44] : memref<4x8x364xf32, #tpu.memory_space<vmem>>, vector<1x8x364xf32>
    %93 = vector.shape_cast %92 : vector<1x8x364xf32> to vector<8x364xf32>
    %c18 = arith.constant 18 : index
    %c0_45 = arith.constant 0 : index
    %c0_46 = arith.constant 0 : index
    %94 = vector.load %arg2[%c18, %c0_45, %c0_46] : memref<36x8x326xf32, #tpu.memory_space<vmem>>, vector<1x8x326xf32>
    %95 = vector.shape_cast %94 : vector<1x8x326xf32> to vector<8x326xf32>
    %96 = vector.extract_strided_slice %93 {offsets = [0, 0], sizes = [8, 326], strides = [1, 1]} : vector<8x364xf32> to vector<8x326xf32>
    %97 = arith.mulf %95, %96 : vector<8x326xf32>
    %c19 = arith.constant 19 : index
    %c0_47 = arith.constant 0 : index
    %c0_48 = arith.constant 0 : index
    %98 = vector.load %arg2[%c19, %c0_47, %c0_48] : memref<36x8x326xf32, #tpu.memory_space<vmem>>, vector<1x8x326xf32>
    %99 = vector.shape_cast %98 : vector<1x8x326xf32> to vector<8x326xf32>
    %100 = vector.extract_strided_slice %93 {offsets = [0, 1], sizes = [8, 326], strides = [1, 1]} : vector<8x364xf32> to vector<8x326xf32>
    %101 = arith.mulf %99, %100 : vector<8x326xf32>
    %102 = arith.addf %97, %101 : vector<8x326xf32>
    %c20 = arith.constant 20 : index
    %c0_49 = arith.constant 0 : index
    %c0_50 = arith.constant 0 : index
    %103 = vector.load %arg2[%c20, %c0_49, %c0_50] : memref<36x8x326xf32, #tpu.memory_space<vmem>>, vector<1x8x326xf32>
    %104 = vector.shape_cast %103 : vector<1x8x326xf32> to vector<8x326xf32>
    %105 = vector.extract_strided_slice %93 {offsets = [0, 2], sizes = [8, 326], strides = [1, 1]} : vector<8x364xf32> to vector<8x326xf32>
    %106 = arith.mulf %104, %105 : vector<8x326xf32>
    %107 = arith.addf %102, %106 : vector<8x326xf32>
    %c21 = arith.constant 21 : index
    %c0_51 = arith.constant 0 : index
    %c0_52 = arith.constant 0 : index
    %108 = vector.load %arg2[%c21, %c0_51, %c0_52] : memref<36x8x326xf32, #tpu.memory_space<vmem>>, vector<1x8x326xf32>
    %109 = vector.shape_cast %108 : vector<1x8x326xf32> to vector<8x326xf32>
    %110 = vector.extract_strided_slice %93 {offsets = [0, 18], sizes = [8, 326], strides = [1, 1]} : vector<8x364xf32> to vector<8x326xf32>
    %111 = arith.mulf %109, %110 : vector<8x326xf32>
    %112 = arith.addf %107, %111 : vector<8x326xf32>
    %c22 = arith.constant 22 : index
    %c0_53 = arith.constant 0 : index
    %c0_54 = arith.constant 0 : index
    %113 = vector.load %arg2[%c22, %c0_53, %c0_54] : memref<36x8x326xf32, #tpu.memory_space<vmem>>, vector<1x8x326xf32>
    %114 = vector.shape_cast %113 : vector<1x8x326xf32> to vector<8x326xf32>
    %115 = vector.extract_strided_slice %93 {offsets = [0, 19], sizes = [8, 326], strides = [1, 1]} : vector<8x364xf32> to vector<8x326xf32>
    %116 = arith.mulf %114, %115 : vector<8x326xf32>
    %117 = arith.addf %112, %116 : vector<8x326xf32>
    %c23 = arith.constant 23 : index
    %c0_55 = arith.constant 0 : index
    %c0_56 = arith.constant 0 : index
    %118 = vector.load %arg2[%c23, %c0_55, %c0_56] : memref<36x8x326xf32, #tpu.memory_space<vmem>>, vector<1x8x326xf32>
    %119 = vector.shape_cast %118 : vector<1x8x326xf32> to vector<8x326xf32>
    %120 = vector.extract_strided_slice %93 {offsets = [0, 20], sizes = [8, 326], strides = [1, 1]} : vector<8x364xf32> to vector<8x326xf32>
    %121 = arith.mulf %119, %120 : vector<8x326xf32>
    %122 = arith.addf %117, %121 : vector<8x326xf32>
    %c24 = arith.constant 24 : index
    %c0_57 = arith.constant 0 : index
    %c0_58 = arith.constant 0 : index
    %123 = vector.load %arg2[%c24, %c0_57, %c0_58] : memref<36x8x326xf32, #tpu.memory_space<vmem>>, vector<1x8x326xf32>
    %124 = vector.shape_cast %123 : vector<1x8x326xf32> to vector<8x326xf32>
    %125 = vector.extract_strided_slice %93 {offsets = [0, 36], sizes = [8, 326], strides = [1, 1]} : vector<8x364xf32> to vector<8x326xf32>
    %126 = arith.mulf %124, %125 : vector<8x326xf32>
    %127 = arith.addf %122, %126 : vector<8x326xf32>
    %c25 = arith.constant 25 : index
    %c0_59 = arith.constant 0 : index
    %c0_60 = arith.constant 0 : index
    %128 = vector.load %arg2[%c25, %c0_59, %c0_60] : memref<36x8x326xf32, #tpu.memory_space<vmem>>, vector<1x8x326xf32>
    %129 = vector.shape_cast %128 : vector<1x8x326xf32> to vector<8x326xf32>
    %130 = vector.extract_strided_slice %93 {offsets = [0, 37], sizes = [8, 326], strides = [1, 1]} : vector<8x364xf32> to vector<8x326xf32>
    %131 = arith.mulf %129, %130 : vector<8x326xf32>
    %132 = arith.addf %127, %131 : vector<8x326xf32>
    %c26 = arith.constant 26 : index
    %c0_61 = arith.constant 0 : index
    %c0_62 = arith.constant 0 : index
    %133 = vector.load %arg2[%c26, %c0_61, %c0_62] : memref<36x8x326xf32, #tpu.memory_space<vmem>>, vector<1x8x326xf32>
    %134 = vector.shape_cast %133 : vector<1x8x326xf32> to vector<8x326xf32>
    %135 = vector.extract_strided_slice %93 {offsets = [0, 38], sizes = [8, 326], strides = [1, 1]} : vector<8x364xf32> to vector<8x326xf32>
    %136 = arith.mulf %134, %135 : vector<8x326xf32>
    %137 = arith.addf %132, %136 : vector<8x326xf32>
    %c3_63 = arith.constant 3 : index
    %c0_64 = arith.constant 0 : index
    %c0_65 = arith.constant 0 : index
    %138 = vector.load %arg1[%c3_63, %c0_64, %c0_65] : memref<4x8x364xf32, #tpu.memory_space<vmem>>, vector<1x8x364xf32>
    %139 = vector.shape_cast %138 : vector<1x8x364xf32> to vector<8x364xf32>
    %c27 = arith.constant 27 : index
    %c0_66 = arith.constant 0 : index
    %c0_67 = arith.constant 0 : index
    %140 = vector.load %arg2[%c27, %c0_66, %c0_67] : memref<36x8x326xf32, #tpu.memory_space<vmem>>, vector<1x8x326xf32>
    %141 = vector.shape_cast %140 : vector<1x8x326xf32> to vector<8x326xf32>
    %142 = vector.extract_strided_slice %139 {offsets = [0, 0], sizes = [8, 326], strides = [1, 1]} : vector<8x364xf32> to vector<8x326xf32>
    %143 = arith.mulf %141, %142 : vector<8x326xf32>
    %c28 = arith.constant 28 : index
    %c0_68 = arith.constant 0 : index
    %c0_69 = arith.constant 0 : index
    %144 = vector.load %arg2[%c28, %c0_68, %c0_69] : memref<36x8x326xf32, #tpu.memory_space<vmem>>, vector<1x8x326xf32>
    %145 = vector.shape_cast %144 : vector<1x8x326xf32> to vector<8x326xf32>
    %146 = vector.extract_strided_slice %139 {offsets = [0, 1], sizes = [8, 326], strides = [1, 1]} : vector<8x364xf32> to vector<8x326xf32>
    %147 = arith.mulf %145, %146 : vector<8x326xf32>
    %148 = arith.addf %143, %147 : vector<8x326xf32>
    %c29 = arith.constant 29 : index
    %c0_70 = arith.constant 0 : index
    %c0_71 = arith.constant 0 : index
    %149 = vector.load %arg2[%c29, %c0_70, %c0_71] : memref<36x8x326xf32, #tpu.memory_space<vmem>>, vector<1x8x326xf32>
    %150 = vector.shape_cast %149 : vector<1x8x326xf32> to vector<8x326xf32>
    %151 = vector.extract_strided_slice %139 {offsets = [0, 2], sizes = [8, 326], strides = [1, 1]} : vector<8x364xf32> to vector<8x326xf32>
    %152 = arith.mulf %150, %151 : vector<8x326xf32>
    %153 = arith.addf %148, %152 : vector<8x326xf32>
    %c30 = arith.constant 30 : index
    %c0_72 = arith.constant 0 : index
    %c0_73 = arith.constant 0 : index
    %154 = vector.load %arg2[%c30, %c0_72, %c0_73] : memref<36x8x326xf32, #tpu.memory_space<vmem>>, vector<1x8x326xf32>
    %155 = vector.shape_cast %154 : vector<1x8x326xf32> to vector<8x326xf32>
    %156 = vector.extract_strided_slice %139 {offsets = [0, 18], sizes = [8, 326], strides = [1, 1]} : vector<8x364xf32> to vector<8x326xf32>
    %157 = arith.mulf %155, %156 : vector<8x326xf32>
    %158 = arith.addf %153, %157 : vector<8x326xf32>
    %c31 = arith.constant 31 : index
    %c0_74 = arith.constant 0 : index
    %c0_75 = arith.constant 0 : index
    %159 = vector.load %arg2[%c31, %c0_74, %c0_75] : memref<36x8x326xf32, #tpu.memory_space<vmem>>, vector<1x8x326xf32>
    %160 = vector.shape_cast %159 : vector<1x8x326xf32> to vector<8x326xf32>
    %161 = vector.extract_strided_slice %139 {offsets = [0, 19], sizes = [8, 326], strides = [1, 1]} : vector<8x364xf32> to vector<8x326xf32>
    %162 = arith.mulf %160, %161 : vector<8x326xf32>
    %163 = arith.addf %158, %162 : vector<8x326xf32>
    %c32 = arith.constant 32 : index
    %c0_76 = arith.constant 0 : index
    %c0_77 = arith.constant 0 : index
    %164 = vector.load %arg2[%c32, %c0_76, %c0_77] : memref<36x8x326xf32, #tpu.memory_space<vmem>>, vector<1x8x326xf32>
    %165 = vector.shape_cast %164 : vector<1x8x326xf32> to vector<8x326xf32>
    %166 = vector.extract_strided_slice %139 {offsets = [0, 20], sizes = [8, 326], strides = [1, 1]} : vector<8x364xf32> to vector<8x326xf32>
    %167 = arith.mulf %165, %166 : vector<8x326xf32>
    %168 = arith.addf %163, %167 : vector<8x326xf32>
    %c33 = arith.constant 33 : index
    %c0_78 = arith.constant 0 : index
    %c0_79 = arith.constant 0 : index
    %169 = vector.load %arg2[%c33, %c0_78, %c0_79] : memref<36x8x326xf32, #tpu.memory_space<vmem>>, vector<1x8x326xf32>
    %170 = vector.shape_cast %169 : vector<1x8x326xf32> to vector<8x326xf32>
    %171 = vector.extract_strided_slice %139 {offsets = [0, 36], sizes = [8, 326], strides = [1, 1]} : vector<8x364xf32> to vector<8x326xf32>
    %172 = arith.mulf %170, %171 : vector<8x326xf32>
    %173 = arith.addf %168, %172 : vector<8x326xf32>
    %c34 = arith.constant 34 : index
    %c0_80 = arith.constant 0 : index
    %c0_81 = arith.constant 0 : index
    %174 = vector.load %arg2[%c34, %c0_80, %c0_81] : memref<36x8x326xf32, #tpu.memory_space<vmem>>, vector<1x8x326xf32>
    %175 = vector.shape_cast %174 : vector<1x8x326xf32> to vector<8x326xf32>
    %176 = vector.extract_strided_slice %139 {offsets = [0, 37], sizes = [8, 326], strides = [1, 1]} : vector<8x364xf32> to vector<8x326xf32>
    %177 = arith.mulf %175, %176 : vector<8x326xf32>
    %178 = arith.addf %173, %177 : vector<8x326xf32>
    %c35 = arith.constant 35 : index
    %c0_82 = arith.constant 0 : index
    %c0_83 = arith.constant 0 : index
    %179 = vector.load %arg2[%c35, %c0_82, %c0_83] : memref<36x8x326xf32, #tpu.memory_space<vmem>>, vector<1x8x326xf32>
    %180 = vector.shape_cast %179 : vector<1x8x326xf32> to vector<8x326xf32>
    %181 = vector.extract_strided_slice %139 {offsets = [0, 38], sizes = [8, 326], strides = [1, 1]} : vector<8x364xf32> to vector<8x326xf32>
    %182 = arith.mulf %180, %181 : vector<8x326xf32>
    %183 = arith.addf %178, %182 : vector<8x326xf32>
    %184 = arith.addf %45, %91 : vector<8x326xf32>
    %185 = arith.addf %137, %183 : vector<8x326xf32>
    %186 = arith.addf %184, %185 : vector<8x326xf32>
    %c0_84 = arith.constant 0 : index
    %c0_85 = arith.constant 0 : index
    %187 = vector.load %arg3[%c0_84, %c0_85] : memref<8x326xf32, #tpu.memory_space<vmem>>, vector<8x326xf32>
    %188 = arith.addf %186, %187 : vector<8x326xf32>
    %cst = arith.constant 0.000000e+00 : f32
    %189 = vector.broadcast %cst : f32 to vector<8x326xf32>
    %190 = arith.maximumf %188, %189 : vector<8x326xf32>
    %c0_86 = arith.constant 0 : index
    %c0_87 = arith.constant 0 : index
    %191 = vector.load %arg4[%c0_86, %c0_87] : memref<8x326xf32, #tpu.memory_space<vmem>>, vector<8x326xf32>
    %192 = arith.mulf %190, %191 : vector<8x326xf32>
    %193 = vector.extract_strided_slice %192 {offsets = [0, 0], sizes = [8, 288], strides = [1, 1]} : vector<8x326xf32> to vector<8x288xf32>
    %c0_88 = arith.constant 0 : index
    %c0_89 = arith.constant 0 : index
    %c0_90 = arith.constant 0 : index
    %194 = vector.load %arg5[%c0_88, %c0_89, %c0_90] : memref<18x8x288xf32, #tpu.memory_space<vmem>>, vector<1x8x288xf32>
    %195 = vector.shape_cast %194 : vector<1x8x288xf32> to vector<8x288xf32>
    %196 = arith.mulf %195, %193 : vector<8x288xf32>
    %c9_91 = arith.constant 9 : index
    %c0_92 = arith.constant 0 : index
    %c0_93 = arith.constant 0 : index
    %197 = vector.load %arg5[%c9_91, %c0_92, %c0_93] : memref<18x8x288xf32, #tpu.memory_space<vmem>>, vector<1x8x288xf32>
    %198 = vector.shape_cast %197 : vector<1x8x288xf32> to vector<8x288xf32>
    %199 = arith.mulf %198, %193 : vector<8x288xf32>
    %200 = vector.extract_strided_slice %192 {offsets = [0, 1], sizes = [8, 288], strides = [1, 1]} : vector<8x326xf32> to vector<8x288xf32>
    %c1_94 = arith.constant 1 : index
    %c0_95 = arith.constant 0 : index
    %c0_96 = arith.constant 0 : index
    %201 = vector.load %arg5[%c1_94, %c0_95, %c0_96] : memref<18x8x288xf32, #tpu.memory_space<vmem>>, vector<1x8x288xf32>
    %202 = vector.shape_cast %201 : vector<1x8x288xf32> to vector<8x288xf32>
    %203 = arith.mulf %202, %200 : vector<8x288xf32>
    %204 = arith.addf %196, %203 : vector<8x288xf32>
    %c10_97 = arith.constant 10 : index
    %c0_98 = arith.constant 0 : index
    %c0_99 = arith.constant 0 : index
    %205 = vector.load %arg5[%c10_97, %c0_98, %c0_99] : memref<18x8x288xf32, #tpu.memory_space<vmem>>, vector<1x8x288xf32>
    %206 = vector.shape_cast %205 : vector<1x8x288xf32> to vector<8x288xf32>
    %207 = arith.mulf %206, %200 : vector<8x288xf32>
    %208 = arith.addf %199, %207 : vector<8x288xf32>
    %209 = vector.extract_strided_slice %192 {offsets = [0, 2], sizes = [8, 288], strides = [1, 1]} : vector<8x326xf32> to vector<8x288xf32>
    %c2_100 = arith.constant 2 : index
    %c0_101 = arith.constant 0 : index
    %c0_102 = arith.constant 0 : index
    %210 = vector.load %arg5[%c2_100, %c0_101, %c0_102] : memref<18x8x288xf32, #tpu.memory_space<vmem>>, vector<1x8x288xf32>
    %211 = vector.shape_cast %210 : vector<1x8x288xf32> to vector<8x288xf32>
    %212 = arith.mulf %211, %209 : vector<8x288xf32>
    %213 = arith.addf %204, %212 : vector<8x288xf32>
    %c11_103 = arith.constant 11 : index
    %c0_104 = arith.constant 0 : index
    %c0_105 = arith.constant 0 : index
    %214 = vector.load %arg5[%c11_103, %c0_104, %c0_105] : memref<18x8x288xf32, #tpu.memory_space<vmem>>, vector<1x8x288xf32>
    %215 = vector.shape_cast %214 : vector<1x8x288xf32> to vector<8x288xf32>
    %216 = arith.mulf %215, %209 : vector<8x288xf32>
    %217 = arith.addf %208, %216 : vector<8x288xf32>
    %218 = vector.extract_strided_slice %192 {offsets = [0, 18], sizes = [8, 288], strides = [1, 1]} : vector<8x326xf32> to vector<8x288xf32>
    %c3_106 = arith.constant 3 : index
    %c0_107 = arith.constant 0 : index
    %c0_108 = arith.constant 0 : index
    %219 = vector.load %arg5[%c3_106, %c0_107, %c0_108] : memref<18x8x288xf32, #tpu.memory_space<vmem>>, vector<1x8x288xf32>
    %220 = vector.shape_cast %219 : vector<1x8x288xf32> to vector<8x288xf32>
    %221 = arith.mulf %220, %218 : vector<8x288xf32>
    %222 = arith.addf %213, %221 : vector<8x288xf32>
    %c12_109 = arith.constant 12 : index
    %c0_110 = arith.constant 0 : index
    %c0_111 = arith.constant 0 : index
    %223 = vector.load %arg5[%c12_109, %c0_110, %c0_111] : memref<18x8x288xf32, #tpu.memory_space<vmem>>, vector<1x8x288xf32>
    %224 = vector.shape_cast %223 : vector<1x8x288xf32> to vector<8x288xf32>
    %225 = arith.mulf %224, %218 : vector<8x288xf32>
    %226 = arith.addf %217, %225 : vector<8x288xf32>
    %227 = vector.extract_strided_slice %192 {offsets = [0, 19], sizes = [8, 288], strides = [1, 1]} : vector<8x326xf32> to vector<8x288xf32>
    %c4_112 = arith.constant 4 : index
    %c0_113 = arith.constant 0 : index
    %c0_114 = arith.constant 0 : index
    %228 = vector.load %arg5[%c4_112, %c0_113, %c0_114] : memref<18x8x288xf32, #tpu.memory_space<vmem>>, vector<1x8x288xf32>
    %229 = vector.shape_cast %228 : vector<1x8x288xf32> to vector<8x288xf32>
    %230 = arith.mulf %229, %227 : vector<8x288xf32>
    %231 = arith.addf %222, %230 : vector<8x288xf32>
    %c13_115 = arith.constant 13 : index
    %c0_116 = arith.constant 0 : index
    %c0_117 = arith.constant 0 : index
    %232 = vector.load %arg5[%c13_115, %c0_116, %c0_117] : memref<18x8x288xf32, #tpu.memory_space<vmem>>, vector<1x8x288xf32>
    %233 = vector.shape_cast %232 : vector<1x8x288xf32> to vector<8x288xf32>
    %234 = arith.mulf %233, %227 : vector<8x288xf32>
    %235 = arith.addf %226, %234 : vector<8x288xf32>
    %236 = vector.extract_strided_slice %192 {offsets = [0, 20], sizes = [8, 288], strides = [1, 1]} : vector<8x326xf32> to vector<8x288xf32>
    %c5_118 = arith.constant 5 : index
    %c0_119 = arith.constant 0 : index
    %c0_120 = arith.constant 0 : index
    %237 = vector.load %arg5[%c5_118, %c0_119, %c0_120] : memref<18x8x288xf32, #tpu.memory_space<vmem>>, vector<1x8x288xf32>
    %238 = vector.shape_cast %237 : vector<1x8x288xf32> to vector<8x288xf32>
    %239 = arith.mulf %238, %236 : vector<8x288xf32>
    %240 = arith.addf %231, %239 : vector<8x288xf32>
    %c14_121 = arith.constant 14 : index
    %c0_122 = arith.constant 0 : index
    %c0_123 = arith.constant 0 : index
    %241 = vector.load %arg5[%c14_121, %c0_122, %c0_123] : memref<18x8x288xf32, #tpu.memory_space<vmem>>, vector<1x8x288xf32>
    %242 = vector.shape_cast %241 : vector<1x8x288xf32> to vector<8x288xf32>
    %243 = arith.mulf %242, %236 : vector<8x288xf32>
    %244 = arith.addf %235, %243 : vector<8x288xf32>
    %245 = vector.extract_strided_slice %192 {offsets = [0, 36], sizes = [8, 288], strides = [1, 1]} : vector<8x326xf32> to vector<8x288xf32>
    %c6_124 = arith.constant 6 : index
    %c0_125 = arith.constant 0 : index
    %c0_126 = arith.constant 0 : index
    %246 = vector.load %arg5[%c6_124, %c0_125, %c0_126] : memref<18x8x288xf32, #tpu.memory_space<vmem>>, vector<1x8x288xf32>
    %247 = vector.shape_cast %246 : vector<1x8x288xf32> to vector<8x288xf32>
    %248 = arith.mulf %247, %245 : vector<8x288xf32>
    %249 = arith.addf %240, %248 : vector<8x288xf32>
    %c15_127 = arith.constant 15 : index
    %c0_128 = arith.constant 0 : index
    %c0_129 = arith.constant 0 : index
    %250 = vector.load %arg5[%c15_127, %c0_128, %c0_129] : memref<18x8x288xf32, #tpu.memory_space<vmem>>, vector<1x8x288xf32>
    %251 = vector.shape_cast %250 : vector<1x8x288xf32> to vector<8x288xf32>
    %252 = arith.mulf %251, %245 : vector<8x288xf32>
    %253 = arith.addf %244, %252 : vector<8x288xf32>
    %254 = vector.extract_strided_slice %192 {offsets = [0, 37], sizes = [8, 288], strides = [1, 1]} : vector<8x326xf32> to vector<8x288xf32>
    %c7_130 = arith.constant 7 : index
    %c0_131 = arith.constant 0 : index
    %c0_132 = arith.constant 0 : index
    %255 = vector.load %arg5[%c7_130, %c0_131, %c0_132] : memref<18x8x288xf32, #tpu.memory_space<vmem>>, vector<1x8x288xf32>
    %256 = vector.shape_cast %255 : vector<1x8x288xf32> to vector<8x288xf32>
    %257 = arith.mulf %256, %254 : vector<8x288xf32>
    %258 = arith.addf %249, %257 : vector<8x288xf32>
    %c16_133 = arith.constant 16 : index
    %c0_134 = arith.constant 0 : index
    %c0_135 = arith.constant 0 : index
    %259 = vector.load %arg5[%c16_133, %c0_134, %c0_135] : memref<18x8x288xf32, #tpu.memory_space<vmem>>, vector<1x8x288xf32>
    %260 = vector.shape_cast %259 : vector<1x8x288xf32> to vector<8x288xf32>
    %261 = arith.mulf %260, %254 : vector<8x288xf32>
    %262 = arith.addf %253, %261 : vector<8x288xf32>
    %263 = vector.extract_strided_slice %192 {offsets = [0, 38], sizes = [8, 288], strides = [1, 1]} : vector<8x326xf32> to vector<8x288xf32>
    %c8_136 = arith.constant 8 : index
    %c0_137 = arith.constant 0 : index
    %c0_138 = arith.constant 0 : index
    %264 = vector.load %arg5[%c8_136, %c0_137, %c0_138] : memref<18x8x288xf32, #tpu.memory_space<vmem>>, vector<1x8x288xf32>
    %265 = vector.shape_cast %264 : vector<1x8x288xf32> to vector<8x288xf32>
    %266 = arith.mulf %265, %263 : vector<8x288xf32>
    %267 = arith.addf %258, %266 : vector<8x288xf32>
    %c17_139 = arith.constant 17 : index
    %c0_140 = arith.constant 0 : index
    %c0_141 = arith.constant 0 : index
    %268 = vector.load %arg5[%c17_139, %c0_140, %c0_141] : memref<18x8x288xf32, #tpu.memory_space<vmem>>, vector<1x8x288xf32>
    %269 = vector.shape_cast %268 : vector<1x8x288xf32> to vector<8x288xf32>
    %270 = arith.mulf %269, %263 : vector<8x288xf32>
    %271 = arith.addf %262, %270 : vector<8x288xf32>
    %272 = vector.extract_strided_slice %267 {offsets = [0, 0], sizes = [1, 288], strides = [1, 1]} : vector<8x288xf32> to vector<1x288xf32>
    %273 = vector.extract_strided_slice %267 {offsets = [1, 0], sizes = [1, 288], strides = [1, 1]} : vector<8x288xf32> to vector<1x288xf32>
    %274 = arith.addf %272, %273 : vector<1x288xf32>
    %275 = vector.extract_strided_slice %267 {offsets = [2, 0], sizes = [1, 288], strides = [1, 1]} : vector<8x288xf32> to vector<1x288xf32>
    %276 = arith.addf %274, %275 : vector<1x288xf32>
    %277 = vector.extract_strided_slice %267 {offsets = [3, 0], sizes = [1, 288], strides = [1, 1]} : vector<8x288xf32> to vector<1x288xf32>
    %278 = arith.addf %276, %277 : vector<1x288xf32>
    %279 = vector.extract_strided_slice %271 {offsets = [0, 0], sizes = [1, 288], strides = [1, 1]} : vector<8x288xf32> to vector<1x288xf32>
    %280 = vector.extract_strided_slice %271 {offsets = [1, 0], sizes = [1, 288], strides = [1, 1]} : vector<8x288xf32> to vector<1x288xf32>
    %281 = arith.addf %279, %280 : vector<1x288xf32>
    %282 = vector.extract_strided_slice %271 {offsets = [2, 0], sizes = [1, 288], strides = [1, 1]} : vector<8x288xf32> to vector<1x288xf32>
    %283 = arith.addf %281, %282 : vector<1x288xf32>
    %284 = vector.extract_strided_slice %271 {offsets = [3, 0], sizes = [1, 288], strides = [1, 1]} : vector<8x288xf32> to vector<1x288xf32>
    %285 = arith.addf %283, %284 : vector<1x288xf32>
    %286 = vector.extract_strided_slice %267 {offsets = [4, 0], sizes = [1, 288], strides = [1, 1]} : vector<8x288xf32> to vector<1x288xf32>
    %287 = vector.extract_strided_slice %267 {offsets = [5, 0], sizes = [1, 288], strides = [1, 1]} : vector<8x288xf32> to vector<1x288xf32>
    %288 = arith.addf %286, %287 : vector<1x288xf32>
    %289 = vector.extract_strided_slice %267 {offsets = [6, 0], sizes = [1, 288], strides = [1, 1]} : vector<8x288xf32> to vector<1x288xf32>
    %290 = arith.addf %288, %289 : vector<1x288xf32>
    %291 = vector.extract_strided_slice %267 {offsets = [7, 0], sizes = [1, 288], strides = [1, 1]} : vector<8x288xf32> to vector<1x288xf32>
    %292 = arith.addf %290, %291 : vector<1x288xf32>
    %293 = vector.extract_strided_slice %271 {offsets = [4, 0], sizes = [1, 288], strides = [1, 1]} : vector<8x288xf32> to vector<1x288xf32>
    %294 = vector.extract_strided_slice %271 {offsets = [5, 0], sizes = [1, 288], strides = [1, 1]} : vector<8x288xf32> to vector<1x288xf32>
    %295 = arith.addf %293, %294 : vector<1x288xf32>
    %296 = vector.extract_strided_slice %271 {offsets = [6, 0], sizes = [1, 288], strides = [1, 1]} : vector<8x288xf32> to vector<1x288xf32>
    %297 = arith.addf %295, %296 : vector<1x288xf32>
    %298 = vector.extract_strided_slice %271 {offsets = [7, 0], sizes = [1, 288], strides = [1, 1]} : vector<8x288xf32> to vector<1x288xf32>
    %299 = arith.addf %297, %298 : vector<1x288xf32>
    %300 = tpu.concatenate %278, %285, %292, %299 in 0 : vector<1x288xf32>, vector<1x288xf32>, vector<1x288xf32>, vector<1x288xf32> -> vector<4x288xf32>
    %c0_142 = arith.constant 0 : index
    %c0_143 = arith.constant 0 : index
    %301 = vector.load %arg6[%c0_142, %c0_143] : memref<4x288xf32, #tpu.memory_space<vmem>>, vector<4x288xf32>
    %302 = arith.addf %300, %301 : vector<4x288xf32>
    %cst_144 = arith.constant 0.000000e+00 : f32
    %303 = vector.broadcast %cst_144 : f32 to vector<4x288xf32>
    %304 = arith.maximumf %302, %303 : vector<4x288xf32>
    %c0_145 = arith.constant 0 : index
    %c0_146 = arith.constant 0 : index
    %305 = vector.load %arg7[%c0_145, %c0_146] : memref<4x288xf32, #tpu.memory_space<vmem>>, vector<4x288xf32>
    tpu.vector_store %arg7[%c0_145, %c0_146], %304 {strides = array<i32>} : memref<4x288xf32, #tpu.memory_space<vmem>>, vector<4x288xf32>,
    return
  }
  func.func @transform_0(%arg0: i32) -> (i32, i32, i32) {
    %c0_i32 = arith.constant 0 : i32
    %c0_i32_0 = arith.constant 0 : i32
    %c0_i32_1 = arith.constant 0 : i32
    %c0_i32_2 = arith.constant 0 : i32
    return %c0_i32, %c0_i32_0, %c0_i32_1 : i32, i32, i32
  }
  func.func @transform_1(%arg0: i32) -> (i32, i32, i32) {
    %c0_i32 = arith.constant 0 : i32
    %c0_i32_0 = arith.constant 0 : i32
    %c0_i32_1 = arith.constant 0 : i32
    %c0_i32_2 = arith.constant 0 : i32
    return %c0_i32, %c0_i32_0, %c0_i32_1 : i32, i32, i32
  }
  func.func @transform_2(%arg0: i32) -> (i32, i32) {
    %c0_i32 = arith.constant 0 : i32
    %c0_i32_0 = arith.constant 0 : i32
    %c0_i32_1 = arith.constant 0 : i32
    return %c0_i32, %c0_i32_0 : i32, i32
  }
  func.func @transform_3(%arg0: i32) -> (i32, i32) {
    %c0_i32 = arith.constant 0 : i32
    %c0_i32_0 = arith.constant 0 : i32
    %c0_i32_1 = arith.constant 0 : i32
    return %c0_i32, %c0_i32_0 : i32, i32
  }
  func.func @transform_4(%arg0: i32) -> (i32, i32, i32) {
    %c0_i32 = arith.constant 0 : i32
    %c0_i32_0 = arith.constant 0 : i32
    %c0_i32_1 = arith.constant 0 : i32
    %c0_i32_2 = arith.constant 0 : i32
    return %c0_i32, %c0_i32_0, %c0_i32_1 : i32, i32, i32
  }
  func.func @transform_5(%arg0: i32) -> (i32, i32) {
    %c0_i32 = arith.constant 0 : i32
    %c0_i32_0 = arith.constant 0 : i32
    %c0_i32_1 = arith.constant 0 : i32
    return %c0_i32, %c0_i32_0 : i32, i32
  }
  func.func @transform_6(%arg0: i32) -> (i32, i32) {
    %c0_i32 = arith.constant 0 : i32
    %c0_i32_0 = arith.constant 0 : i32
    %c0_i32_1 = arith.constant 0 : i32
    return %c0_i32, %c0_i32_0 : i32, i32
  }
}

</mosaic_0001>

<bundles_post_ra>
// kernel: tile.26
= control target key start
LH: loop header
LB: loop body
LE: loop exit
PB: predicated region body
PF: predicated region fallthrough
CT: control target
= control target key end

     0   :  { %s22_s0 = inlined_call_operand.vmem [shape: f32[4], index: 0, kind: input, shape index: {}]   ;;  %s23_s1 = inlined_call_operand.vmem [shape: f32[2,1,1,4], index: 1, kind: output, shape index: {}]  }
   0x1   :  { %v4_v0 = vld [vmem:[%s22_s0] ss:$0 sm:$0xff] }
   0x2   :  { %5 = vst [vmem:[%s23_s1] sm:$0x3] %v4_v0 }

// kernel: tile.30
= control target key start
LH: loop header
LB: loop body
LE: loop exit
PB: predicated region body
PF: predicated region fallthrough
CT: control target
= control target key end

     0   :  { %s22_s0 = inlined_call_operand.vmem [shape: f32[2], index: 0, kind: input, shape index: {}]   ;;  %s23_s1 = inlined_call_operand.vmem [shape: f32[2,1,1,2], index: 1, kind: output, shape index: {}]  }
   0x1   :  { %v4_v0 = vld [vmem:[%s22_s0] ss:$0 sm:$0xff] }
   0x2   :  { %5 = vst [vmem:[%s23_s1] sm:$0x3] %v4_v0 }

// kernel: _lambda_.1
= control target key start
LH: loop header
LB: loop body
LE: loop exit
PB: predicated region body
PF: predicated region fallthrough
CT: control target
= control target key end

     0   :  { %s1337_s25 = smov 127   ;;  %s1338_s28 = smov 126   ;;  %vm45_vm0 = vcmask 1039360   ;;  %vm67_vm1 = vcmask 1031168   ;;  %vm89_vm2 = vcmask 900096   ;;  %vm111_vm3 = vcmask 891904   ;;  %s2415_s0 = inlined_call_operand.vmem [shape: f32[4,8,364], index: 0, kind: input, shape index: {}]   ;;  %s2416_s1 = inlined_call_operand.vmem [shape: f32[36,8,326], index: 1, kind: input, shape index: {}]   ;;  %s2417_s2 = inlined_call_operand.vmem [shape: f32[8,326], index: 2, kind: input, shape index: {}]   ;;  %s2418_s3 = inlined_call_operand.vmem [shape: f32[8,326], index: 3, kind: input, shape index: {}]   ;;  %s2419_s4 = inlined_call_operand.vmem [shape: f32[18,8,288], index: 4, kind: input, shape index: {}]   ;;  %s2420_s5 = inlined_call_operand.vmem [shape: f32[4,288], index: 5, kind: input, shape index: {}]   ;;  %s2421_s6 = inlined_call_operand.vmem [shape: f32[4,288], index: 6, kind: output, shape index: {}]  }
   0x1   :  { %v1383_v0 = vld [vmem:[%s2415_s0 + $0x10] sm:$0xff]  ;;  %v1388_v1 = vld [vmem:[%s2415_s0] sm:$0xff]  ;;  %v1397_v2 = vld [vmem:[%s2415_s0 + $0x8] sm:$0xff]  ;;  %s1339_s29 = smov 110   ;;  %s1340_s30 = smov 109   ;;  %vm133_vm4 = vcmask 883712  }
   0x2   :  { %43 = vrot.lane.b32.xlu1 %v1383_v0, %s1337_s25  ;;  %39 = vrot.lane.b32.xlu0 %v1388_v1, %s1337_s25  ;;  %s1341_s7 = smov 108   ;;  %s1342_s8 = smov 92   ;;  %v1446_v3 = vld [vmem:[%s2415_s0 + $0x20] sm:$0xff]  ;;  %v1451_v4 = vld [vmem:[%s2415_s0 + $0x18] sm:$0xff]  ;;  %vm155_vm5 = vcmask 752640   ;;  %vm177_vm6 = vcmask 744448  }
   0x3   :  { %s1343_s9 = smov 91   ;;  %s1344_s10 = smov 90   ;;  %v1460_v5 = vld [vmem:[%s2415_s0 + $0x28] sm:$0xff]  ;;  %v1469_v6 = vld [vmem:[%s2415_s0 + $0x30] sm:$0xff]  ;;  %v1478_v7 = vld [vmem:[%s2415_s0 + $0x40] sm:$0xff]  ;;  %vm199_vm7 = vcmask 736256  }
   0x4   :  { %v1483_v8 = vld [vmem:[%s2415_s0 + $0x38] sm:$0xff]  ;;  %v1492_v9 = vld [vmem:[%s2415_s0 + $0x50] sm:$0xff]  ;;  %v1497_v10 = vld [vmem:[%s2415_s0 + $0x48] sm:$0xff]  ;;  %vm1129_vm8 = vcmask 1040384   ;;  %vm1133_vm9 = vcmask 1041408   ;;  %vm1137_vm10 = vcmask 1042432  }
   0x5   :  { %v1506_v11 = vld [vmem:[%s2415_s0 + $0x58] sm:$0xff]  ;;  %v28_v24 = vld [vmem:[%s2416_s1 + $0x10] sm:$0xff]  ;;  %v26_v25 = vld [vmem:[%s2416_s1] sm:$0xff]  ;;  %vm1157_vm11 = vcmask 257024  }
   0x6   :  { %61 = vrot.lane.b32.xlu1 %v1388_v1, %s1338_s28  ;;  %41 = vrot.lane.b32.xlu0 %v1397_v2, %s1337_s25  ;;  %v1165_v28 = vld [vmem:[%s2416_s1 + $0x28] sm:$0xff]  ;;  %v1163_v29 = vld [vmem:[%s2416_s1 + $0x18] sm:$0xff]  ;;  %v31_v34 = vmul.f32 %v28_v24, %v1383_v0  ;;  %v29_v35 = vmul.f32 %v26_v25, %v1388_v1 }
   0x7   :  { %v27_v31 = vld [vmem:[%s2416_s1 + $0x8] sm:$0xff]  ;;  %v1164_v32 = vld [vmem:[%s2416_s1 + $0x20] sm:$0xff]  ;;  %v1166_v37 = vld [vmem:[%s2416_s1 + $0x30] sm:$0xff] }
   0x8   :  { %v1168_v36 = vld [vmem:[%s2416_s1 + $0x40] sm:$0xff]  ;;  %v1167_v41 = vld [vmem:[%s2416_s1 + $0x38] sm:$0xff]  ;;  %v30_v45 = vmul.f32 %v27_v31, %v1397_v2  ;;  %v1169_v47 = vld [vmem:[%s2416_s1 + $0x48] sm:$0xff] }
   0x9   :  { %v1171_v49 = vld [vmem:[%s2416_s1 + $0x58] sm:$0xff]  ;;  %v1170_v52 = vld [vmem:[%s2416_s1 + $0x50] sm:$0xff]  ;;  %v1172_v55 = vld [vmem:[%s2416_s1 + $0x60] sm:$0xff] }
   0xa   :  { %65 = vrot.lane.b32.xlu1 %v1383_v0, %s1338_s28  ;;  %63 = vrot.lane.b32.xlu0 %v1397_v2, %s1338_s28  ;;  %v1174_v61 = vld [vmem:[%s2416_s1 + $0x70] sm:$0xff] }
   0xb   :  { %v1178_v24 = vld [vmem:[%s2416_s1 + $0x90] sm:$0xff] }
   0xe   :  { %85 = vrot.lane.b32.xlu1 %v1397_v2, %s1339_s29  ;;  %83 = vrot.lane.b32.xlu0 %v1388_v1, %s1339_s29 }
  0x12   :  { %105 = vrot.lane.b32.xlu1 %v1388_v1, %s1340_s30  ;;  %87 = vrot.lane.b32.xlu0 %v1383_v0, %s1339_s29 }
  0x16   :  { %109 = vrot.lane.b32.xlu1 %v1383_v0, %s1340_s30  ;;  %107 = vrot.lane.b32.xlu0 %v1397_v2, %s1340_s30 }
  0x1a   :  { %129 = vrot.lane.b32.xlu1 %v1397_v2, %s1341_s7  ;;  %127 = vrot.lane.b32.xlu0 %v1388_v1, %s1341_s7 }
  0x1e   :  { %149 = vrot.lane.b32.xlu1 %v1388_v1, %s1342_s8  ;;  %131 = vrot.lane.b32.xlu0 %v1383_v0, %s1341_s7 }
  0x22   :  { %153 = vrot.lane.b32.xlu1 %v1383_v0, %s1342_s8  ;;  %151 = vrot.lane.b32.xlu0 %v1397_v2, %s1342_s8 }
  0x26   :  { %173 = vrot.lane.b32.xlu1 %v1397_v2, %s1343_s9  ;;  %171 = vrot.lane.b32.xlu0 %v1388_v1, %s1343_s9 }
  0x2a   :  { %193 = vrot.lane.b32.xlu1 %v1388_v1, %s1344_s10  ;;  %175 = vrot.lane.b32.xlu0 %v1383_v0, %s1343_s9 }
  0x2e   :  { %197 = vrot.lane.b32.xlu1 %v1383_v0, %s1344_s10  ;;  %195 = vrot.lane.b32.xlu0 %v1397_v2, %s1344_s10  ;;  %v1173_v2 = vld [vmem:[%s2416_s1 + $0x68] sm:$0xff] }
  0x32   :  { %231 = vrot.lane.b32.xlu1 %v1446_v3, %s1337_s25  ;;  %229 = vrot.lane.b32.xlu0 %v1451_v4, %s1337_s25 }
  0x36   :  { %250 = vrot.lane.b32.xlu1 %v1451_v4, %s1338_s28  ;;  %233 = vrot.lane.b32.xlu0 %v1460_v5, %s1337_s25 }
  0x3a   :  { %411 = vrot.lane.b32.xlu1 %v1469_v6, %s1337_s25  ;;  %252 = vrot.lane.b32.xlu0 %v1446_v3, %s1338_s28 }
  0x3e   :  { %415 = vrot.lane.b32.xlu1 %v1478_v7, %s1337_s25  ;;  %413 = vrot.lane.b32.xlu0 %v1483_v8, %s1337_s25 }
  0x42   :  { %595 = vrot.lane.b32.xlu1 %v1492_v9, %s1337_s25  ;;  %593 = vrot.lane.b32.xlu0 %v1497_v10, %s1337_s25 }
  0x46   :  { %254 = vrot.lane.b32.xlu1 %v1460_v5, %s1338_s28  ;;  %597 = vrot.lane.b32.xlu0 %v1506_v11, %s1337_s25 }
  0x4a   :  { %434 = vrot.lane.b32.xlu1 %v1483_v8, %s1338_s28  ;;  %432 = vrot.lane.b32.xlu0 %v1469_v6, %s1338_s28 }
  0x4e   :  { %614 = vrot.lane.b32.xlu1 %v1497_v10, %s1338_s28  ;;  %436 = vrot.lane.b32.xlu0 %v1478_v7, %s1338_s28 }
  0x52   :  { %618 = vrot.lane.b32.xlu1 %v1506_v11, %s1338_s28  ;;  %616 = vrot.lane.b32.xlu0 %v1492_v9, %s1338_s28 }
  0x56   :  { %273 = vrot.lane.b32.xlu1 %v1446_v3, %s1339_s29  ;;  %271 = vrot.lane.b32.xlu0 %v1451_v4, %s1339_s29 }
  0x5a   :  { %453 = vrot.lane.b32.xlu1 %v1469_v6, %s1339_s29  ;;  %275 = vrot.lane.b32.xlu0 %v1460_v5, %s1339_s29 }
  0x5e   :  { %457 = vrot.lane.b32.xlu1 %v1478_v7, %s1339_s29  ;;  %455 = vrot.lane.b32.xlu0 %v1483_v8, %s1339_s29 }
  0x62   :  { %637 = vrot.lane.b32.xlu1 %v1492_v9, %s1339_s29  ;;  %635 = vrot.lane.b32.xlu0 %v1497_v10, %s1339_s29 }
  0x66   :  { %292 = vrot.lane.b32.xlu1 %v1451_v4, %s1340_s30  ;;  %639 = vrot.lane.b32.xlu0 %v1506_v11, %s1339_s29 }
  0x6a   :  { %296 = vrot.lane.b32.xlu1 %v1460_v5, %s1340_s30  ;;  %294 = vrot.lane.b32.xlu0 %v1446_v3, %s1340_s30 }
  0x6e   :  { %476 = vrot.lane.b32.xlu1 %v1483_v8, %s1340_s30  ;;  %474 = vrot.lane.b32.xlu0 %v1469_v6, %s1340_s30 }
  0x72   :  { %656 = vrot.lane.b32.xlu1 %v1497_v10, %s1340_s30  ;;  %478 = vrot.lane.b32.xlu0 %v1478_v7, %s1340_s30 }
  0x74   :  { %v44_v12 = vpop.permute.xlu1 %43  ;;  %v40_v13 = vpop.permute.xlu0 %39 }
  0x75   :  { %v53_v39 = vmul.f32 %v1165_v28, %v44_v12 }
  0x76   :  { %660 = vrot.lane.b32.xlu1 %v1506_v11, %s1340_s30  ;;  %658 = vrot.lane.b32.xlu0 %v1492_v9, %s1340_s30 }
  0x77   :  { %v56_v57 = vadd.f32 %v53_v39, %v31_v34 }
  0x78   :  { %v62_v14 = vpop.permute.xlu1 %61  ;;  %v42_v15 = vpop.permute.xlu0 %41 }
  0x79   :  { %v46_v30 = vsel %vm45_vm0, %v40_v13, %v42_v15  ;;  %v47_v33 = vsel %vm45_vm0, %v42_v15, %v44_v12  ;;  %v1175_v13 = vld [vmem:[%s2416_s1 + $0x78] sm:$0xff] }
  0x7a   :  { %315 = vrot.lane.b32.xlu1 %v1446_v3, %s1341_s7  ;;  %313 = vrot.lane.b32.xlu0 %v1451_v4, %s1341_s7  ;;  %v51_v40 = vmul.f32 %v1163_v29, %v46_v30  ;;  %v52_v46 = vmul.f32 %v1164_v32, %v47_v33 }
  0x7c   :  { %v66_v16 = vpop.permute.xlu1 %65  ;;  %v64_v17 = vpop.permute.xlu0 %63  ;;  %v54_v58 = vadd.f32 %v51_v40, %v29_v35  ;;  %v55_v0 = vadd.f32 %v52_v46, %v30_v45 }
  0x7d   :  { %v68_v38 = vsel %vm67_vm1, %v62_v14, %v64_v17  ;;  %v69_v42 = vsel %vm67_vm1, %v64_v17, %v66_v16  ;;  %v75_v50 = vmul.f32 %v1168_v36, %v66_v16  ;;  %v1181_v36 = vld [vmem:[%s2416_s1 + $0xa8] sm:$0xff] }
  0x7e   :  { %495 = vrot.lane.b32.xlu1 %v1469_v6, %s1341_s7  ;;  %317 = vrot.lane.b32.xlu0 %v1460_v5, %s1341_s7  ;;  %v73_v51 = vmul.f32 %v1166_v37, %v68_v38  ;;  %v74_v54 = vmul.f32 %v1167_v41, %v69_v42  ;;  %v1183_v41 = vld [vmem:[%s2416_s1 + $0xb8] sm:$0xff] }
  0x7f   :  { %v78_v15 = vadd.f32 %v75_v50, %v56_v57  ;;  %v1186_v57 = vld [vmem:[%s2416_s1 + $0xd0] sm:$0xff] }
  0x80   :  { %v86_v18 = vpop.permute.xlu1 %85  ;;  %v84_v19 = vpop.permute.xlu0 %83  ;;  %v76_v16 = vadd.f32 %v73_v51, %v54_v58 }
  0x81   :  { %v90_v48 = vsel %vm89_vm2, %v84_v19, %v86_v18  ;;  %v77_v19 = vadd.f32 %v74_v54, %v55_v0 }
  0x82   :  { %499 = vrot.lane.b32.xlu1 %v1478_v7, %s1341_s7  ;;  %497 = vrot.lane.b32.xlu0 %v1483_v8, %s1341_s7  ;;  %v95_v59 = vmul.f32 %v1169_v47, %v90_v48 }
  0x84   :  { %v106_v20 = vpop.permute.xlu1 %105  ;;  %v88_v21 = vpop.permute.xlu0 %87 }
  0x85   :  { %v91_v53 = vsel %vm89_vm2, %v86_v18, %v88_v21  ;;  %v97_v60 = vmul.f32 %v1171_v49, %v88_v21  ;;  %v1177_v18 = vld [vmem:[%s2416_s1 + $0x88] sm:$0xff]  ;;  %v1176_v21 = vld [vmem:[%s2416_s1 + $0x80] sm:$0xff] }
  0x86   :  { %679 = vrot.lane.b32.xlu1 %v1492_v9, %s1341_s7  ;;  %677 = vrot.lane.b32.xlu0 %v1497_v10, %s1341_s7  ;;  %v96_v1 = vmul.f32 %v1170_v52, %v91_v53 }
  0x87   :  { %v100_v28 = vadd.f32 %v97_v60, %v78_v15  ;;  %v1185_v60 = vld [vmem:[%s2416_s1 + $0xc8] sm:$0xff] }
  0x88   :  { %v1576_v22 = vpop.permute.xlu1 %109  ;;  %v108_v23 = vpop.permute.xlu0 %107  ;;  %v99_v33 = vadd.f32 %v96_v1, %v77_v19 }
  0x89   :  { %v112_v56 = vsel %vm111_vm3, %v106_v20, %v108_v23  ;;  %v113_v12 = vsel %vm111_vm3, %v108_v23, %v1576_v22  ;;  %v119_v20 = vmul.f32 %v1174_v61, %v1576_v22  ;;  %v1180_v22 = vld [vmem:[%s2416_s1 + $0xa0] sm:$0xff] }
  0x8a   :  { %334 = vrot.lane.b32.xlu1 %v1451_v4, %s1342_s8  ;;  %681 = vrot.lane.b32.xlu0 %v1506_v11, %s1341_s7  ;;  %v117_v17 = vmul.f32 %v1172_v55, %v112_v56  ;;  %v118_v29 = vmul.f32 %v1173_v2, %v113_v12 }
  0x8b   :  { %v122_v42 = vadd.f32 %v119_v20, %v100_v28 }
  0x8c   :  { %v1588_v26 = vpop.permute.xlu1 %129  ;;  %v128_v27 = vpop.permute.xlu0 %127  ;;  %v121_v45 = vadd.f32 %v118_v29, %v99_v33 }
  0x8d   :  { %v134_v14 = vsel %vm133_vm4, %v128_v27, %v1588_v26  ;;  %v98_v27 = vadd.f32 %v95_v59, %v76_v16  ;;  %v1184_v59 = vld [vmem:[%s2416_s1 + $0xc0] sm:$0xff] }
  0x8e   :  { %338 = vrot.lane.b32.xlu1 %v1460_v5, %s1342_s8  ;;  %336 = vrot.lane.b32.xlu0 %v1446_v3, %s1342_s8  ;;  %v139_v30 = vmul.f32 %v1175_v13, %v134_v14 }
  0x8f   :  { %v120_v38 = vadd.f32 %v117_v17, %v98_v27 }
  0x90   :  { %v150_v43 = vpop.permute.xlu1 %149  ;;  %v132_v44 = vpop.permute.xlu0 %131 }
  0x91   :  { %v135_v23 = vsel %vm133_vm4, %v1588_v26, %v132_v44  ;;  %v141_v34 = vmul.f32 %v1177_v18, %v132_v44  ;;  %v1179_v26 = vld [vmem:[%s2416_s1 + $0x98] sm:$0xff]  ;;  %v1182_v44 = vld [vmem:[%s2416_s1 + $0xb0] sm:$0xff]  ;;  %v142_v46 = vadd.f32 %v139_v30, %v120_v38 }
  0x92   :  { %518 = vrot.lane.b32.xlu1 %v1483_v8, %s1342_s8  ;;  %516 = vrot.lane.b32.xlu0 %v1469_v6, %s1342_s8  ;;  %v140_v39 = vmul.f32 %v1176_v21, %v135_v23 }
  0x93   :  { %v144_v51 = vadd.f32 %v141_v34, %v122_v42  ;;  %v1195_v42 = vld [vmem:[%s2416_s1 + $0x100] sm:$0xff] }
  0x94   :  { %v154_v62 = vpop.permute.xlu1 %153  ;;  %v152_v63 = vpop.permute.xlu0 %151  ;;  %v143_v54 = vadd.f32 %v140_v39, %v121_v45 }
  0x95   :  { %v156_v25 = vsel %vm155_vm5, %v150_v43, %v152_v63  ;;  %v157_v35 = vsel %vm155_vm5, %v152_v63, %v154_v62  ;;  %v163_v43 = vmul.f32 %v1180_v22, %v154_v62 }
  0x96   :  { %698 = vrot.lane.b32.xlu1 %v1497_v10, %s1342_s8  ;;  %520 = vrot.lane.b32.xlu0 %v1478_v7, %s1342_s8  ;;  %v161_v40 = vmul.f32 %v1178_v24, %v156_v25  ;;  %v162_v47 = vmul.f32 %v1179_v26, %v157_v35  ;;  %v1190_v24 = vld [vmem:[%s2416_s1 + $0xd8] sm:$0xff]  ;;  %v1193_v25 = vld [vmem:[%s2416_s1 + $0xf0] sm:$0xff] }
  0x97   :  { %v166_v58 = vadd.f32 %v163_v43, %v144_v51  ;;  %v219_v30 = vmul.f32 %v1190_v24, %v1451_v4  ;;  %v1194_v43 = vld [vmem:[%s2416_s1 + $0xf8] sm:$0xff]  ;;  %v1251_v24 = vld [vmem:[%s2416_s1 + $0x290] sm:$0xff] }
  0x98   :  { %v174_v31 = vpop.permute.xlu1 %173  ;;  %v172_v32 = vpop.permute.xlu0 %171  ;;  %v164_v55 = vadd.f32 %v161_v40, %v142_v46  ;;  %v165_v61 = vadd.f32 %v162_v47, %v143_v54 }
  0x99   :  { %v178_v37 = vsel %vm177_vm6, %v172_v32, %v174_v31 }
  0x9a   :  { %702 = vrot.lane.b32.xlu1 %v1506_v11, %s1342_s8  ;;  %700 = vrot.lane.b32.xlu0 %v1492_v9, %s1342_s8  ;;  %v183_v48 = vmul.f32 %v1181_v36, %v178_v37 }
  0x9c   :  { %v194_v49 = vpop.permute.xlu1 %193  ;;  %v176_v50 = vpop.permute.xlu0 %175  ;;  %v186_v62 = vadd.f32 %v183_v48, %v164_v55  ;;  %v1220_v48 = vld [vmem:[%s2416_s1 + $0x1b0] sm:$0xff] }
  0x9d   :  { %v179_v52 = vsel %vm177_vm6, %v174_v31, %v176_v50  ;;  %v185_v53 = vmul.f32 %v1183_v41, %v176_v50  ;;  %v1196_v31 = vld [vmem:[%s2416_s1 + $0x108] sm:$0xff] }
  0x9e   :  { %v184_v56 = vmul.f32 %v1182_v44, %v179_v52  ;;  %357 = vrot.lane.b32.xlu1 %v1446_v3, %s1343_s9  ;;  %355 = vrot.lane.b32.xlu0 %v1451_v4, %s1343_s9  ;;  %v1192_v41 = vld [vmem:[%s2416_s1 + $0xe8] sm:$0xff] }
  0x9f   :  { %v188_v1 = vadd.f32 %v185_v53, %v166_v58  ;;  %v221_v46 = vmul.f32 %v1192_v41, %v1460_v5  ;;  %v1223_v52 = vld [vmem:[%s2416_s1 + $0x1c8] sm:$0xff]  ;;  %v1197_v53 = vld [vmem:[%s2416_s1 + $0x110] sm:$0xff] }
  0xa0   :  { %v198_v63 = vpop.permute.xlu1 %197  ;;  %v196_v0 = vpop.permute.xlu0 %195  ;;  %v187_v14 = vadd.f32 %v184_v56, %v165_v61 }
  0xa1   :  { %v207_v2 = vmul.f32 %v1186_v57, %v198_v63  ;;  %v200_v12 = vsel %vm199_vm7, %v194_v49, %v196_v0  ;;  %v201_v13 = vsel %vm199_vm7, %v196_v0, %v198_v63  ;;  %v1222_v57 = vld [vmem:[%s2416_s1 + $0x1c0] sm:$0xff] }
  0xa2   :  { %v205_v15 = vmul.f32 %v1184_v59, %v200_v12  ;;  %v206_v16 = vmul.f32 %v1185_v60, %v201_v13  ;;  %537 = vrot.lane.b32.xlu1 %v1469_v6, %s1343_s9  ;;  %359 = vrot.lane.b32.xlu0 %v1460_v5, %s1343_s9  ;;  %v1226_v12 = vld [vmem:[%s2416_s1 + $0x1e0] sm:$0xff] }
  0xa3   :  { %v1712_v17 = vadd.f32 %v207_v2, %v188_v1  ;;  %v1224_v1 = vld [vmem:[%s2416_s1 + $0x1d0] sm:$0xff] }
  0xa4   :  { %v1714_v18 = vadd.f32 %v205_v15, %v186_v62  ;;  %v1716_v19 = vadd.f32 %v206_v16, %v187_v14  ;;  %v232_v20 = vpop.permute.xlu1 %231  ;;  %v230_v21 = vpop.permute.xlu0 %229  ;;  %v1225_v62 = vld [vmem:[%s2416_s1 + $0x1d8] sm:$0xff]  ;;  %v403_v16 = vmul.f32 %v1222_v57, %v1478_v7  ;;  %v1199_v57 = vld [vmem:[%s2416_s1 + $0x120] sm:$0xff] }
  0xa5   :  { %v235_v23 = vsel %vm45_vm0, %v230_v21, %v232_v20 }
  0xa6   :  { %541 = vrot.lane.b32.xlu1 %v1478_v7, %s1343_s9  ;;  %539 = vrot.lane.b32.xlu0 %v1483_v8, %s1343_s9  ;;  %v240_v22 = vmul.f32 %v1193_v25, %v235_v23  ;;  %v1250_v23 = vld [vmem:[%s2416_s1 + $0x288] sm:$0xff]  ;;  %v1252_v25 = vld [vmem:[%s2416_s1 + $0x298] sm:$0xff] }
  0xa8   :  { %v251_v27 = vpop.permute.xlu1 %250  ;;  %v234_v28 = vpop.permute.xlu0 %233  ;;  %v243_v26 = vadd.f32 %v240_v22, %v219_v30  ;;  %v1228_v30 = vld [vmem:[%s2416_s1 + $0x1f0] sm:$0xff]  ;;  %v1253_v22 = vld [vmem:[%s2416_s1 + $0x2a0] sm:$0xff] }
  0xa9   :  { %v236_v29 = vsel %vm45_vm0, %v232_v20, %v234_v28  ;;  %v242_v47 = vmul.f32 %v1195_v42, %v234_v28 }
  0xaa   :  { %721 = vrot.lane.b32.xlu1 %v1492_v9, %s1343_s9  ;;  %719 = vrot.lane.b32.xlu0 %v1497_v10, %s1343_s9  ;;  %v241_v51 = vmul.f32 %v1194_v43, %v236_v29 }
  0xab   :  { %v245_v56 = vadd.f32 %v242_v47, %v221_v46 }
  0xac   :  { %v412_v32 = vpop.permute.xlu1 %411  ;;  %v253_v33 = vpop.permute.xlu0 %252 }
  0xad   :  { %v256_v34 = vsel %vm67_vm1, %v251_v27, %v253_v33 }
  0xae   :  { %v261_v35 = vmul.f32 %v1196_v31, %v256_v34  ;;  %376 = vrot.lane.b32.xlu1 %v1451_v4, %s1344_s10  ;;  %723 = vrot.lane.b32.xlu0 %v1506_v11, %s1343_s9  ;;  %v1191_v4 = vld [vmem:[%s2416_s1 + $0xe0] sm:$0xff]  ;;  %v1254_v31 = vld [vmem:[%s2416_s1 + $0x2a8] sm:$0xff]  ;;  %v584_v34 = vmul.f32 %v1251_v24, %v1492_v9 }
  0xaf   :  { %v220_v50 = vmul.f32 %v1191_v4, %v1446_v3  ;;  %v1229_v24 = vld [vmem:[%s2416_s1 + $0x1f8] sm:$0xff] }
  0xb0   :  { %v1743_v36 = vadd.f32 %v261_v35, %v243_v26  ;;  %v416_v37 = vpop.permute.xlu1 %415  ;;  %v414_v38 = vpop.permute.xlu0 %413  ;;  %v585_v26 = vmul.f32 %v1252_v25, %v1506_v11 }
  0xb1   :  { %v417_v39 = vsel %vm45_vm0, %v412_v32, %v414_v38  ;;  %v418_v40 = vsel %vm45_vm0, %v414_v38, %v416_v37  ;;  %v244_v61 = vadd.f32 %v241_v51, %v220_v50  ;;  %v424_v20 = vmul.f32 %v1225_v62, %v416_v37  ;;  %v1227_v32 = vld [vmem:[%s2416_s1 + $0x1e8] sm:$0xff] }
  0xb2   :  { %380 = vrot.lane.b32.xlu1 %v1460_v5, %s1344_s10  ;;  %378 = vrot.lane.b32.xlu0 %v1446_v3, %s1344_s10  ;;  %v1198_v5 = vld [vmem:[%s2416_s1 + $0x118] sm:$0xff]  ;;  %v401_v3 = vmul.f32 %v1220_v48, %v1469_v6  ;;  %v422_v63 = vmul.f32 %v1223_v52, %v417_v39  ;;  %v423_v28 = vmul.f32 %v1224_v1, %v418_v40 }
  0xb3   :  { %v427_v39 = vadd.f32 %v424_v20, %v403_v16 }
  0xb4   :  { %v596_v44 = vpop.permute.xlu1 %595  ;;  %v594_v45 = vpop.permute.xlu0 %593  ;;  %v425_v29 = vadd.f32 %v422_v63, %v401_v3  ;;  %v1201_v63 = vld [vmem:[%s2416_s1 + $0x130] sm:$0xff] }
  0xb5   :  { %v599_v49 = vsel %vm45_vm0, %v594_v45, %v596_v44 }
  0xb6   :  { %560 = vrot.lane.b32.xlu1 %v1483_v8, %s1344_s10  ;;  %558 = vrot.lane.b32.xlu0 %v1469_v6, %s1344_s10  ;;  %v1221_v6 = vld [vmem:[%s2416_s1 + $0x1b8] sm:$0xff]  ;;  %v604_v43 = vmul.f32 %v1253_v22, %v599_v49 }
  0xb7   :  { %v402_v21 = vmul.f32 %v1221_v6, %v1483_v8 }
  0xb8   :  { %v255_v54 = vpop.permute.xlu1 %254  ;;  %v598_v55 = vpop.permute.xlu0 %597 }
  0xb9   :  { %v257_v58 = vsel %vm67_vm1, %v253_v33, %v255_v54  ;;  %v263_v59 = vmul.f32 %v1198_v5, %v255_v54  ;;  %v600_v60 = vsel %vm45_vm0, %v596_v44, %v598_v55  ;;  %v583_v33 = vmul.f32 %v1250_v23, %v1497_v10 }
  0xba   :  { %v262_v0 = vmul.f32 %v1197_v53, %v257_v58  ;;  %740 = vrot.lane.b32.xlu1 %v1497_v10, %s1344_s10  ;;  %562 = vrot.lane.b32.xlu0 %v1478_v7, %s1344_s10  ;;  %v1255_v7 = vld [vmem:[%s2416_s1 + $0x2b0] sm:$0xff]  ;;  %v426_v4 = vadd.f32 %v423_v28, %v402_v21  ;;  %v605_v44 = vmul.f32 %v1254_v31, %v600_v60  ;;  %v1258_v10 = vld [vmem:[%s2416_s1 + $0x2c8] sm:$0xff] }
  0xbb   :  { %v1801_v2 = vadd.f32 %v263_v59, %v245_v56  ;;  %v606_v40 = vmul.f32 %v1255_v7, %v598_v55  ;;  %v607_v53 = vadd.f32 %v604_v43, %v583_v33  ;;  %v1231_v21 = vld [vmem:[%s2416_s1 + $0x208] sm:$0xff]  ;;  %v1259_v31 = vld [vmem:[%s2416_s1 + $0x2d0] sm:$0xff] }
  0xbc   :  { %v1806_v13 = vadd.f32 %v262_v0, %v244_v61  ;;  %v435_v14 = vpop.permute.xlu1 %434  ;;  %v433_v15 = vpop.permute.xlu0 %432  ;;  %v608_v3 = vadd.f32 %v605_v44, %v584_v34  ;;  %v1200_v0 = vld [vmem:[%s2416_s1 + $0x128] sm:$0xff] }
  0xbd   :  { %v438_v27 = vsel %vm67_vm1, %v433_v15, %v435_v14  ;;  %v609_v51 = vadd.f32 %v606_v40, %v585_v26  ;;  %v1204_v44 = vld [vmem:[%s2416_s1 + $0x148] sm:$0xff] }
  0xbe   :  { %v443_v8 = vmul.f32 %v1226_v12, %v438_v27  ;;  %744 = vrot.lane.b32.xlu1 %v1506_v11, %s1344_s10  ;;  %742 = vrot.lane.b32.xlu0 %v1492_v9, %s1344_s10  ;;  %v1256_v9 = vld [vmem:[%s2416_s1 + $0x2b8] sm:$0xff]  ;;  %v1257_v11 = vld [vmem:[%s2416_s1 + $0x2c0] sm:$0xff] }
  0xc0   :  { %v446_v35 = vadd.f32 %v443_v8, %v425_v29  ;;  %v615_v37 = vpop.permute.xlu1 %614  ;;  %v437_v38 = vpop.permute.xlu0 %436 }
  0xc1   :  { %v439_v41 = vsel %vm67_vm1, %v435_v14, %v437_v38  ;;  %v445_v42 = vmul.f32 %v1228_v30, %v437_v38  ;;  %v1261_v38 = vld [vmem:[%s2416_s1 + $0x2e0] sm:$0xff] }
  0xc2   :  { %v444_v45 = vmul.f32 %v1227_v32, %v439_v41 }
  0xc3   :  { %v448_v46 = vadd.f32 %v445_v42, %v427_v39  ;;  %v1260_v39 = vld [vmem:[%s2416_s1 + $0x2d8] sm:$0xff] }
  0xc4   :  { %v447_v47 = vadd.f32 %v444_v45, %v426_v4  ;;  %v619_v48 = vpop.permute.xlu1 %618  ;;  %v617_v50 = vpop.permute.xlu0 %616 }
  0xc5   :  { %v627_v49 = vmul.f32 %v1258_v10, %v619_v48  ;;  %v620_v5 = vsel %vm67_vm1, %v615_v37, %v617_v50  ;;  %v621_v52 = vsel %vm67_vm1, %v617_v50, %v619_v48  ;;  %v1202_v10 = vld [vmem:[%s2416_s1 + $0x138] sm:$0xff] }
  0xc6   :  { %v625_v54 = vmul.f32 %v1256_v9, %v620_v5  ;;  %v626_v55 = vmul.f32 %v1257_v11, %v621_v52 }
  0xc7   :  { %v630_v56 = vadd.f32 %v627_v49, %v609_v51 }
  0xc8   :  { %v628_v58 = vadd.f32 %v625_v54, %v607_v53  ;;  %v629_v59 = vadd.f32 %v626_v55, %v608_v3  ;;  %v274_v60 = vpop.permute.xlu1 %273  ;;  %v272_v61 = vpop.permute.xlu0 %271  ;;  %v1232_v53 = vld [vmem:[%s2416_s1 + $0x210] sm:$0xff] }
  0xc9   :  { %v277_v62 = vsel %vm89_vm2, %v272_v61, %v274_v60 }
  0xca   :  { %v282_v6 = vmul.f32 %v1199_v57, %v277_v62 }
  0xcc   :  { %v285_v1 = vadd.f32 %v282_v6, %v1743_v36  ;;  %v454_v12 = vpop.permute.xlu1 %453  ;;  %v276_v14 = vpop.permute.xlu0 %275  ;;  %v1230_v36 = vld [vmem:[%s2416_s1 + $0x200] sm:$0xff] }
  0xcd   :  { %v278_v15 = vsel %vm89_vm2, %v274_v60, %v276_v14  ;;  %v284_v16 = vmul.f32 %v1201_v63, %v276_v14  ;;  %v1233_v60 = vld [vmem:[%s2416_s1 + $0x218] sm:$0xff] }
  0xce   :  { %v283_v20 = vmul.f32 %v1200_v0, %v278_v15  ;;  %v1262_v15 = vld [vmem:[%s2416_s1 + $0x2e8] sm:$0xff] }
  0xcf   :  { %v287_v23 = vadd.f32 %v284_v16, %v1801_v2  ;;  %v1263_v16 = vld [vmem:[%s2416_s1 + $0x2f0] sm:$0xff] }
  0xd0   :  { %v286_v25 = vadd.f32 %v283_v20, %v1806_v13  ;;  %v458_v27 = vpop.permute.xlu1 %457  ;;  %v456_v28 = vpop.permute.xlu0 %455 }
  0xd1   :  { %v466_v29 = vmul.f32 %v1231_v21, %v458_v27  ;;  %v459_v7 = vsel %vm89_vm2, %v454_v12, %v456_v28  ;;  %v460_v8 = vsel %vm89_vm2, %v456_v28, %v458_v27  ;;  %v1264_v12 = vld [vmem:[%s2416_s1 + $0x2f8] sm:$0xff] }
  0xd2   :  { %v464_v30 = vmul.f32 %v1229_v24, %v459_v7  ;;  %v465_v22 = vmul.f32 %v1230_v36, %v460_v8 }
  0xd3   :  { %v469_v2 = vadd.f32 %v466_v29, %v448_v46  ;;  %v1203_v46 = vld [vmem:[%s2416_s1 + $0x140] sm:$0xff] }
  0xd4   :  { %v467_v32 = vadd.f32 %v464_v30, %v446_v35  ;;  %v468_v33 = vadd.f32 %v465_v22, %v447_v47  ;;  %v638_v34 = vpop.permute.xlu1 %637  ;;  %v636_v26 = vpop.permute.xlu0 %635 }
  0xd5   :  { %v641_v13 = vsel %vm89_vm2, %v636_v26, %v638_v34 }
  0xd6   :  { %v646_v37 = vmul.f32 %v1259_v31, %v641_v13 }
  0xd8   :  { %v649_v40 = vadd.f32 %v646_v37, %v628_v58  ;;  %v293_v41 = vpop.permute.xlu1 %292  ;;  %v640_v42 = vpop.permute.xlu0 %639 }
  0xd9   :  { %v642_v4 = vsel %vm89_vm2, %v638_v34, %v640_v42  ;;  %v648_v35 = vmul.f32 %v1261_v38, %v640_v42 }
  0xda   :  { %v647_v43 = vmul.f32 %v1260_v39, %v642_v4 }
  0xdb   :  { %v651_v45 = vadd.f32 %v648_v35, %v630_v56 }
  0xdc   :  { %v650_v9 = vadd.f32 %v647_v43, %v629_v59  ;;  %v297_v11 = vpop.permute.xlu1 %296  ;;  %v295_v47 = vpop.permute.xlu0 %294  ;;  %v1234_v59 = vld [vmem:[%s2416_s1 + $0x220] sm:$0xff] }
  0xdd   :  { %v305_v48 = vmul.f32 %v1204_v44, %v297_v11  ;;  %v298_v50 = vsel %vm111_vm3, %v293_v41, %v295_v47  ;;  %v299_v51 = vsel %vm111_vm3, %v295_v47, %v297_v11  ;;  %v1205_v47 = vld [vmem:[%s2416_s1 + $0x150] sm:$0xff] }
  0xde   :  { %v303_v49 = vmul.f32 %v1202_v10, %v298_v50  ;;  %v304_v5 = vmul.f32 %v1203_v46, %v299_v51  ;;  %v1207_v50 = vld [vmem:[%s2416_s1 + $0x160] sm:$0xff]  ;;  %v1206_v51 = vld [vmem:[%s2416_s1 + $0x158] sm:$0xff] }
  0xdf   :  { %v1901_v52 = vadd.f32 %v305_v48, %v287_v23 }
  0xe0   :  { %v1906_v3 = vadd.f32 %v303_v49, %v285_v1  ;;  %v1908_v54 = vadd.f32 %v304_v5, %v286_v25  ;;  %v477_v55 = vpop.permute.xlu1 %476  ;;  %v475_v56 = vpop.permute.xlu0 %474  ;;  %v1237_v5 = vld [vmem:[%s2416_s1 + $0x238] sm:$0xff] }
  0xe1   :  { %v480_v57 = vsel %vm111_vm3, %v475_v56, %v477_v55 }
  0xe2   :  { %v485_v58 = vmul.f32 %v1232_v53, %v480_v57  ;;  %v1235_v53 = vld [vmem:[%s2416_s1 + $0x228] sm:$0xff] }
  0xe4   :  { %v1917_v61 = vadd.f32 %v485_v58, %v467_v32  ;;  %v657_v62 = vpop.permute.xlu1 %656  ;;  %v479_v6 = vpop.permute.xlu0 %478 }
  0xe5   :  { %v481_v63 = vsel %vm111_vm3, %v477_v55, %v479_v6  ;;  %v487_v0 = vmul.f32 %v1234_v59, %v479_v6  ;;  %v1236_v55 = vld [vmem:[%s2416_s1 + $0x230] sm:$0xff]  ;;  %v1210_v6 = vld [vmem:[%s2416_s1 + $0x178] sm:$0xff] }
  0xe6   :  { %v486_v1 = vmul.f32 %v1233_v60, %v481_v63  ;;  %v1265_v60 = vld [vmem:[%s2416_s1 + $0x300] sm:$0xff] }
  0xe7   :  { %v1923_v14 = vadd.f32 %v487_v0, %v469_v2 }
  0xe8   :  { %v1931_v20 = vadd.f32 %v486_v1, %v468_v33  ;;  %v661_v21 = vpop.permute.xlu1 %660  ;;  %v659_v23 = vpop.permute.xlu0 %658 }
  0xe9   :  { %v669_v24 = vmul.f32 %v1264_v12, %v661_v21  ;;  %v662_v36 = vsel %vm111_vm3, %v657_v62, %v659_v23  ;;  %v663_v25 = vsel %vm111_vm3, %v659_v23, %v661_v21 }
  0xea   :  { %v667_v27 = vmul.f32 %v1262_v15, %v662_v36  ;;  %v668_v28 = vmul.f32 %v1263_v16, %v663_v25  ;;  %v1208_v15 = vld [vmem:[%s2416_s1 + $0x168] sm:$0xff]  ;;  %v1209_v16 = vld [vmem:[%s2416_s1 + $0x170] sm:$0xff] }
  0xeb   :  { %v1935_v29 = vadd.f32 %v669_v24, %v651_v45  ;;  %v1213_v25 = vld [vmem:[%s2416_s1 + $0x190] sm:$0xff] }
  0xec   :  { %v1937_v7 = vadd.f32 %v667_v27, %v649_v40  ;;  %v1939_v8 = vadd.f32 %v668_v28, %v650_v9  ;;  %v316_v30 = vpop.permute.xlu1 %315  ;;  %v314_v22 = vpop.permute.xlu0 %313 }
  0xed   :  { %v319_v48 = vsel %vm133_vm4, %v314_v22, %v316_v30 }
  0xee   :  { %v324_v58 = vmul.f32 %v1205_v47, %v319_v48 }
  0xf0   :  { %v496_v2 = vpop.permute.xlu1 %495  ;;  %v318_v31 = vpop.permute.xlu0 %317 }
  0xf1   :  { %v320_v49 = vsel %vm133_vm4, %v316_v30, %v318_v31  ;;  %v326_v59 = vmul.f32 %v1207_v50, %v318_v31  ;;  %v1211_v30 = vld [vmem:[%s2416_s1 + $0x180] sm:$0xff] }
  0xf2   :  { %v325_v1 = vmul.f32 %v1206_v51, %v320_v49 }
  0xf4   :  { %v500_v32 = vpop.permute.xlu1 %499  ;;  %v498_v33 = vpop.permute.xlu0 %497 }
  0xf5   :  { %v501_v56 = vsel %vm133_vm4, %v496_v2, %v498_v33  ;;  %v502_v57 = vsel %vm133_vm4, %v498_v33, %v500_v32  ;;  %v508_v12 = vmul.f32 %v1237_v5, %v500_v32  ;;  %v1212_v2 = vld [vmem:[%s2416_s1 + $0x188] sm:$0xff]  ;;  %v327_v32 = vadd.f32 %v324_v58, %v1906_v3 }
  0xf6   :  { %v506_v24 = vmul.f32 %v1235_v53, %v501_v56  ;;  %v507_v36 = vmul.f32 %v1236_v55, %v502_v57  ;;  %v1266_v33 = vld [vmem:[%s2416_s1 + $0x308] sm:$0xff]  ;;  %v329_v3 = vadd.f32 %v326_v59, %v1901_v52  ;;  %v1238_v57 = vld [vmem:[%s2416_s1 + $0x240] sm:$0xff] }
  0xf7   :  { %v2027_v48 = vadd.f32 %v508_v12, %v1923_v14  ;;  %v1216_v53 = vld [vmem:[%s2416_s1 + $0x1a8] sm:$0xff] }
  0xf8   :  { %v680_v34 = vpop.permute.xlu1 %679  ;;  %v678_v26 = vpop.permute.xlu0 %677  ;;  %v509_v51 = vadd.f32 %v506_v24, %v1917_v61  ;;  %v2031_v49 = vadd.f32 %v507_v36, %v1931_v20  ;;  %v1214_v61 = vld [vmem:[%s2416_s1 + $0x198] sm:$0xff]  ;;  %v1215_v20 = vld [vmem:[%s2416_s1 + $0x1a0] sm:$0xff]  ;;  %v1270_v36 = vld [vmem:[%s2416_s1 + $0x328] sm:$0xff] }
  0xf9   :  { %v683_v62 = vsel %vm133_vm4, %v678_v26, %v680_v34  ;;  %v1267_v26 = vld [vmem:[%s2416_s1 + $0x310] sm:$0xff] }
  0xfa   :  { %v688_v27 = vmul.f32 %v1265_v60, %v683_v62  ;;  %v1240_v60 = vld [vmem:[%s2416_s1 + $0x250] sm:$0xff] }
  0xfc   :  { %v335_v13 = vpop.permute.xlu1 %334  ;;  %v1941_v37 = vpop.permute.xlu0 %681  ;;  %v2037_v55 = vadd.f32 %v688_v27, %v1937_v7 }
  0xfd   :  { %v690_v52 = vmul.f32 %v1267_v26, %v1941_v37 }
 0x100   :  { %v339_v38 = vpop.permute.xlu1 %338  ;;  %v337_v39 = vpop.permute.xlu0 %336 }
 0x101   :  { %v340_v21 = vsel %vm155_vm5, %v335_v13, %v337_v39  ;;  %v341_v23 = vsel %vm155_vm5, %v337_v39, %v339_v38  ;;  %v347_v28 = vmul.f32 %v1210_v6, %v339_v38  ;;  %v684_v13 = vsel %vm133_vm4, %v680_v34, %v1941_v37 }
 0x102   :  { %v345_v38 = vmul.f32 %v1208_v15, %v340_v21  ;;  %v346_v39 = vmul.f32 %v1209_v16, %v341_v23  ;;  %v693_v23 = vadd.f32 %v690_v52, %v1935_v29  ;;  %v1269_v29 = vld [vmem:[%s2416_s1 + $0x320] sm:$0xff] }
 0x103   :  { %v350_v14 = vadd.f32 %v347_v28, %v329_v3  ;;  %v1273_v3 = vld [vmem:[%s2416_s1 + $0x340] sm:$0xff] }
 0x104   :  { %v1943_v41 = vpop.permute.xlu1 %518  ;;  %v1945_v42 = vpop.permute.xlu0 %516 }
 0x105   :  { %v522_v7 = vsel %vm155_vm5, %v1945_v42, %v1943_v41  ;;  %v1239_v42 = vld [vmem:[%s2416_s1 + $0x248] sm:$0xff] }
 0x106   :  { %v527_v24 = vmul.f32 %v1238_v57, %v522_v7 }
 0x108   :  { %v1947_v40 = vpop.permute.xlu1 %698  ;;  %v1949_v4 = vpop.permute.xlu0 %520 }
 0x109   :  { %v523_v37 = vsel %vm155_vm5, %v1943_v41, %v1949_v4 }
 0x10c   :  { %v1951_v35 = vpop.permute.xlu1 %702  ;;  %v1953_v43 = vpop.permute.xlu0 %700 }
 0x10d   :  { %v704_v27 = vsel %vm155_vm5, %v1947_v40, %v1953_v43  ;;  %v528_v40 = vmul.f32 %v1239_v42, %v523_v37 }
 0x110   :  { %v358_v44 = vpop.permute.xlu1 %357  ;;  %v356_v45 = vpop.permute.xlu0 %355 }
 0x111   :  { %v361_v22 = vsel %vm177_vm6, %v356_v45, %v358_v44 }
 0x112   :  { %v366_v5 = vmul.f32 %v1211_v30, %v361_v22  ;;  %v529_v30 = vmul.f32 %v1240_v60, %v1949_v4  ;;  %v705_v22 = vsel %vm155_vm5, %v1953_v43, %v1951_v35  ;;  %v1241_v4 = vld [vmem:[%s2416_s1 + $0x258] sm:$0xff] }
 0x114   :  { %v1955_v10 = vpop.permute.xlu1 %537  ;;  %v360_v46 = vpop.permute.xlu0 %359 }
 0x115   :  { %v362_v31 = vsel %vm177_vm6, %v358_v44, %v360_v46  ;;  %v328_v44 = vadd.f32 %v325_v1, %v1908_v54  ;;  %v368_v50 = vmul.f32 %v1213_v25, %v360_v46  ;;  %v689_v54 = vmul.f32 %v1266_v33, %v684_v13  ;;  %v1268_v25 = vld [vmem:[%s2416_s1 + $0x318] sm:$0xff]  ;;  %v1242_v13 = vld [vmem:[%s2416_s1 + $0x260] sm:$0xff] }
 0x116   :  { %v367_v34 = vmul.f32 %v1212_v2, %v362_v31  ;;  %v348_v46 = vadd.f32 %v345_v38, %v327_v32  ;;  %v1243_v2 = vld [vmem:[%s2416_s1 + $0x268] sm:$0xff] }
 0x117   :  { %v349_v56 = vadd.f32 %v346_v39, %v328_v44  ;;  %v371_v62 = vadd.f32 %v368_v50, %v350_v14  ;;  %v709_v44 = vmul.f32 %v1268_v25, %v704_v27 }
 0x118   :  { %v1957_v9 = vpop.permute.xlu1 %541  ;;  %v1959_v11 = vpop.permute.xlu0 %539  ;;  %v369_v15 = vadd.f32 %v366_v5, %v348_v46 }
 0x119   :  { %v370_v16 = vadd.f32 %v367_v34, %v349_v56  ;;  %v543_v43 = vsel %vm177_vm6, %v1955_v10, %v1959_v11  ;;  %v544_v38 = vsel %vm177_vm6, %v1959_v11, %v1957_v9  ;;  %v710_v34 = vmul.f32 %v1269_v29, %v705_v22  ;;  %v1271_v11 = vld [vmem:[%s2416_s1 + $0x330] sm:$0xff] }
 0x11a   :  { %v550_v10 = vmul.f32 %v1243_v2, %v1957_v9  ;;  %v548_v9 = vmul.f32 %v1241_v4, %v543_v43  ;;  %v549_v52 = vmul.f32 %v1242_v13, %v544_v38  ;;  %v1244_v56 = vld [vmem:[%s2416_s1 + $0x270] sm:$0xff]  ;;  %v766_v13 = vld [vmem:[%s2417_s2] sm:$0xff]  ;;  %v767_v43 = vld [vmem:[%s2417_s2 + $0x8] sm:$0xff] }
 0x11c   :  { %v1990_v63 = vpop.permute.xlu1 %721  ;;  %v1992_v0 = vpop.permute.xlu0 %719 }
 0x120   :  { %v377_v45 = vpop.permute.xlu1 %376  ;;  %v2022_v47 = vpop.permute.xlu0 %723 }
 0x121   :  { %v732_v46 = vmul.f32 %v1273_v3, %v2022_v47 }
 0x124   :  { %v381_v58 = vpop.permute.xlu1 %380  ;;  %v379_v59 = vpop.permute.xlu0 %378 }
 0x125   :  { %v389_v6 = vmul.f32 %v1216_v53, %v381_v58  ;;  %v382_v1 = vsel %vm199_vm7, %v377_v45, %v379_v59  ;;  %v383_v12 = vsel %vm199_vm7, %v379_v59, %v381_v58  ;;  %v711_v45 = vmul.f32 %v1270_v36, %v1951_v35  ;;  %v1272_v35 = vld [vmem:[%s2416_s1 + $0x338] sm:$0xff] }
 0x126   :  { %v387_v21 = vmul.f32 %v1214_v61, %v382_v1  ;;  %v388_v41 = vmul.f32 %v1215_v20, %v383_v12  ;;  %v530_v53 = vadd.f32 %v527_v24, %v509_v51  ;;  %v1246_v61 = vld [vmem:[%s2416_s1 + $0x280] sm:$0xff] }
 0x127   :  { %v392_v28 = vadd.f32 %v389_v6, %v371_v62  ;;  %v714_v57 = vadd.f32 %v711_v45, %v693_v23  ;;  %v1274_v62 = vld [vmem:[%s2416_s1 + $0x348] sm:$0xff] }
 0x128   :  { %v390_v31 = vadd.f32 %v387_v21, %v369_v15  ;;  %v391_v32 = vadd.f32 %v388_v41, %v370_v16  ;;  %v561_v33 = vpop.permute.xlu1 %560  ;;  %v559_v26 = vpop.permute.xlu0 %558  ;;  %v551_v6 = vadd.f32 %v548_v9, %v530_v53 }
 0x129   :  { %v759_v39 = vadd.f32 %v392_v28, %v1712_v17  ;;  %v725_v17 = vsel %vm177_vm6, %v1992_v0, %v1990_v63  ;;  %v532_v0 = vadd.f32 %v529_v30, %v2027_v48  ;;  %v712_v48 = vadd.f32 %v709_v44, %v2037_v55 }
 0x12a   :  { %v757_v50 = vadd.f32 %v390_v31, %v1714_v18  ;;  %v758_v5 = vadd.f32 %v391_v32, %v1716_v19  ;;  %v726_v18 = vsel %vm177_vm6, %v1990_v63, %v2022_v47  ;;  %v692_v19 = vadd.f32 %v689_v54, %v1939_v8  ;;  %v1245_v8 = vld [vmem:[%s2416_s1 + $0x278] sm:$0xff] }
 0x12b   :  { %v564_v63 = vsel %vm199_vm7, %v559_v26, %v561_v33  ;;  %v531_v54 = vadd.f32 %v528_v40, %v2031_v49  ;;  %v730_v7 = vmul.f32 %v1271_v11, %v725_v17  ;;  %v731_v37 = vmul.f32 %v1272_v35, %v726_v18  ;;  %v1276_v47 = vld [vmem:[%s2416_s1 + $0x358] sm:$0xff]  ;;  %v1275_v49 = vld [vmem:[%s2416_s1 + $0x350] sm:$0xff] }
 0x12c   :  { %v741_v14 = vpop.permute.xlu1 %740  ;;  %v563_v20 = vpop.permute.xlu0 %562  ;;  %v713_v58 = vadd.f32 %v710_v34, %v692_v19  ;;  %v553_v59 = vadd.f32 %v550_v10, %v532_v0  ;;  %v569_v12 = vmul.f32 %v1244_v56, %v564_v63  ;;  %v735_v21 = vadd.f32 %v732_v46, %v714_v57  ;;  %v768_v40 = vld [vmem:[%s2417_s2 + $0x10] sm:$0xff]  ;;  %v775_v10 = vld [vmem:[%s2418_s3] sm:$0xff]  ;;  %v1279_v63 = vld [vmem:[%s2419_s4 + $0xe8] sm:$0xff] }
 0x12d   :  { %v565_v51 = vsel %vm199_vm7, %v561_v33, %v563_v20  ;;  %v571_v60 = vmul.f32 %v1246_v61, %v563_v20  ;;  %v552_v1 = vadd.f32 %v549_v52, %v531_v54  ;;  %v733_v24 = vadd.f32 %v730_v7, %v712_v48  ;;  %v783_v56 = vld [vmem:[%s2419_s4 + $0x10] sm:$0xff]  ;;  %v1282_v48 = vld [vmem:[%s2419_s4 + $0x28] sm:$0xff] }
 0x12e   :  { %v570_v42 = vmul.f32 %v1245_v8, %v565_v51  ;;  %v734_v36 = vadd.f32 %v731_v37, %v713_v58  ;;  %v572_v29 = vadd.f32 %v569_v12, %v551_v6  ;;  %v781_v8 = vld [vmem:[%s2419_s4] sm:$0xff]  ;;  %v1280_v51 = vld [vmem:[%s2419_s4 + $0x18] sm:$0xff]  ;;  %v1283_v54 = vld [vmem:[%s2419_s4 + $0xf0] sm:$0xff] }
 0x12f   :  { %v574_v28 = vadd.f32 %v571_v60, %v553_v59  ;;  %v1285_v58 = vld [vmem:[%s2419_s4 + $0x100] sm:$0xff]  ;;  %v1277_v60 = vld [vmem:[%s2419_s4 + $0xd8] sm:$0xff] }
 0x130   :  { %v745_v15 = vpop.permute.xlu1 %744  ;;  %v743_v16 = vpop.permute.xlu0 %742  ;;  %v573_v22 = vadd.f32 %v570_v42, %v552_v1  ;;  %v1288_v42 = vld [vmem:[%s2419_s4 + $0x40] sm:$0xff] }
 0x131   :  { %v753_v41 = vmul.f32 %v1276_v47, %v745_v15  ;;  %v746_v55 = vsel %vm199_vm7, %v741_v14, %v743_v16  ;;  %v747_v23 = vsel %vm199_vm7, %v743_v16, %v745_v15  ;;  %v1281_v47 = vld [vmem:[%s2419_s4 + $0x20] sm:$0xff]  ;;  %v1291_v15 = vld [vmem:[%s2419_s4 + $0x118] sm:$0xff] }
 0x132   :  { %v751_v25 = vmul.f32 %v1274_v62, %v746_v55  ;;  %v752_v27 = vmul.f32 %v1275_v49, %v747_v23  ;;  %v782_v62 = vld [vmem:[%s2419_s4 + $0x8] sm:$0xff]  ;;  %v1284_v49 = vld [vmem:[%s2419_s4 + $0xf8] sm:$0xff]  ;;  %v1278_v16 = vld [vmem:[%s2419_s4 + $0xe0] sm:$0xff] }
 0x133   :  { %v756_v30 = vadd.f32 %v753_v41, %v735_v21 }
 0x134   :  { %v754_v2 = vadd.f32 %v751_v25, %v733_v24  ;;  %v755_v31 = vadd.f32 %v752_v27, %v734_v36 }
 0x135   :  { %v762_v32 = vadd.f32 %v756_v30, %v574_v28 }
 0x136   :  { %v760_v33 = vadd.f32 %v754_v2, %v572_v29  ;;  %v761_v26 = vadd.f32 %v755_v31, %v573_v22  ;;  %v1286_v2 = vld [vmem:[%s2419_s4 + $0x30] sm:$0xff]  ;;  %v1287_v31 = vld [vmem:[%s2419_s4 + $0x38] sm:$0xff] }
 0x137   :  { %v765_v4 = vadd.f32 %v762_v32, %v759_v39  ;;  %v776_v39 = vld [vmem:[%s2418_s3 + $0x8] sm:$0xff] }
 0x138   :  { %v763_v38 = vadd.f32 %v760_v33, %v757_v50  ;;  %v764_v45 = vadd.f32 %v761_v26, %v758_v5  ;;  %v777_v50 = vld [vmem:[%s2418_s3 + $0x10] sm:$0xff]  ;;  %v1289_v32 = vld [vmem:[%s2419_s4 + $0x108] sm:$0xff] }
 0x139   :  { %v771_v44 = vadd.f32 %v768_v40, %v765_v4 }
 0x13a   :  { %v769_v3 = vadd.f32 %v766_v13, %v763_v38  ;;  %v770_v34 = vadd.f32 %v767_v43, %v764_v45  ;;  %v1290_v43 = vld [vmem:[%s2419_s4 + $0x110] sm:$0xff] }
 0x13b   :  { %v774_v35 = vmax.f32 %v771_v44, 0.0 }
 0x13c   :  { %v772_v11 = vmax.f32 %v769_v3, 0.0  ;;  %v773_v17 = vmax.f32 %v770_v34, 0.0  ;;  %v1292_v3 = vld [vmem:[%s2419_s4 + $0x48] sm:$0xff]  ;;  %v1295_v34 = vld [vmem:[%s2419_s4 + $0x120] sm:$0xff] }
 0x13d   :  { %v780_v5 = vmul.f32 %v777_v50, %v774_v35  ;;  %v1293_v50 = vld [vmem:[%s2419_s4 + $0x50] sm:$0xff] }
 0x13e   :  { %v2157_v18 = vmul.f32 %v775_v10, %v772_v11  ;;  %v2159_v19 = vmul.f32 %v776_v39, %v773_v17  ;;  %v1294_v39 = vld [vmem:[%s2419_s4 + $0x58] sm:$0xff] }
 0x13f   :  { %v786_v12 = vmul.f32 %v783_v56, %v780_v5  ;;  %v793_v21 = vmul.f32 %v1279_v63, %v780_v5 }
 0x140   :  { %803 = vrot.lane.b32.xlu1 %v2159_v19, %s1337_s25  ;;  %801 = vrot.lane.b32.xlu0 %v2157_v18, %s1337_s25  ;;  %v784_v25 = vmul.f32 %v781_v8, %v2157_v18  ;;  %v791_v27 = vmul.f32 %v1277_v60, %v2157_v18  ;;  %v785_v28 = vmul.f32 %v782_v62, %v2159_v19 }
 0x141   :  { %v792_v13 = vmul.f32 %v1278_v16, %v2159_v19 }
 0x144   :  { %832 = vrot.lane.b32.xlu1 %v2157_v18, %s1338_s28  ;;  %805 = vrot.lane.b32.xlu0 %v780_v5, %s1337_s25 }
 0x148   :  { %836 = vrot.lane.b32.xlu1 %v780_v5, %s1338_s28  ;;  %834 = vrot.lane.b32.xlu0 %v2159_v19, %s1338_s28 }
 0x14c   :  { %865 = vrot.lane.b32.xlu1 %v2159_v19, %s1339_s29  ;;  %863 = vrot.lane.b32.xlu0 %v2157_v18, %s1339_s29 }
 0x150   :  { %894 = vrot.lane.b32.xlu1 %v2157_v18, %s1340_s30  ;;  %867 = vrot.lane.b32.xlu0 %v780_v5, %s1339_s29 }
 0x154   :  { %898 = vrot.lane.b32.xlu1 %v780_v5, %s1340_s30  ;;  %896 = vrot.lane.b32.xlu0 %v2159_v19, %s1340_s30 }
 0x158   :  { %927 = vrot.lane.b32.xlu1 %v2159_v19, %s1341_s7  ;;  %925 = vrot.lane.b32.xlu0 %v2157_v18, %s1341_s7 }
 0x15c   :  { %956 = vrot.lane.b32.xlu1 %v2157_v18, %s1342_s8  ;;  %929 = vrot.lane.b32.xlu0 %v780_v5, %s1341_s7 }
 0x160   :  { %960 = vrot.lane.b32.xlu1 %v780_v5, %s1342_s8  ;;  %958 = vrot.lane.b32.xlu0 %v2159_v19, %s1342_s8 }
 0x164   :  { %989 = vrot.lane.b32.xlu1 %v2159_v19, %s1343_s9  ;;  %987 = vrot.lane.b32.xlu0 %v2157_v18, %s1343_s9 }
 0x168   :  { %1018 = vrot.lane.b32.xlu1 %v2157_v18, %s1344_s10  ;;  %991 = vrot.lane.b32.xlu0 %v780_v5, %s1343_s9 }
 0x16c   :  { %1022 = vrot.lane.b32.xlu1 %v780_v5, %s1344_s10  ;;  %1020 = vrot.lane.b32.xlu0 %v2159_v19, %s1344_s10  ;;  %v1296_v5 = vld [vmem:[%s2419_s4 + $0x128] sm:$0xff] }
 0x1b2   :  { %v804_v53 = vpop.permute.xlu1 %803  ;;  %v802_v9 = vpop.permute.xlu0 %801 }
 0x1b3   :  { %v807_v57 = vsel %vm45_vm0, %v802_v9, %v804_v53 }
 0x1b4   :  { %v812_v6 = vmul.f32 %v1280_v51, %v807_v57  ;;  %v822_v1 = vmul.f32 %v1283_v54, %v807_v57  ;;  %v1303_v51 = vld [vmem:[%s2419_s4 + $0x148] sm:$0xff] }
 0x1b6   :  { %v833_v52 = vpop.permute.xlu1 %832  ;;  %v806_v14 = vpop.permute.xlu0 %805  ;;  %v815_v40 = vadd.f32 %v812_v6, %v784_v25  ;;  %v825_v4 = vadd.f32 %v822_v1, %v791_v27  ;;  %v1306_v27 = vld [vmem:[%s2419_s4 + $0x88] sm:$0xff] }
 0x1b7   :  { %v808_v59 = vsel %vm45_vm0, %v804_v53, %v806_v14  ;;  %v814_v55 = vmul.f32 %v1282_v48, %v806_v14  ;;  %v824_v23 = vmul.f32 %v1285_v58, %v806_v14  ;;  %v1297_v53 = vld [vmem:[%s2419_s4 + $0x130] sm:$0xff]  ;;  %v1299_v58 = vld [vmem:[%s2419_s4 + $0x68] sm:$0xff] }
 0x1b8   :  { %v813_v41 = vmul.f32 %v1281_v47, %v808_v59  ;;  %v823_v30 = vmul.f32 %v1284_v49, %v808_v59 }
 0x1b9   :  { %v817_v45 = vadd.f32 %v814_v55, %v786_v12  ;;  %v827_v44 = vadd.f32 %v824_v23, %v793_v21  ;;  %v1304_v21 = vld [vmem:[%s2419_s4 + $0x78] sm:$0xff] }
 0x1ba   :  { %v837_v61 = vpop.permute.xlu1 %836  ;;  %v835_v20 = vpop.permute.xlu0 %834  ;;  %v816_v38 = vadd.f32 %v813_v41, %v785_v28 }
 0x1bb   :  { %v845_v29 = vmul.f32 %v1288_v42, %v837_v61  ;;  %v855_v22 = vmul.f32 %v1291_v15, %v837_v61  ;;  %v838_v33 = vsel %vm67_vm1, %v833_v52, %v835_v20  ;;  %v839_v26 = vsel %vm67_vm1, %v835_v20, %v837_v61 }
 0x1bc   :  { %v843_v35 = vmul.f32 %v1286_v2, %v838_v33  ;;  %v844_v18 = vmul.f32 %v1287_v31, %v839_v26  ;;  %v853_v19 = vmul.f32 %v1289_v32, %v838_v33  ;;  %v826_v52 = vadd.f32 %v823_v30, %v792_v13  ;;  %v1309_v2 = vld [vmem:[%s2419_s4 + $0x160] sm:$0xff]  ;;  %v1308_v13 = vld [vmem:[%s2419_s4 + $0x158] sm:$0xff] }
 0x1bd   :  { %v848_v14 = vadd.f32 %v845_v29, %v817_v45  ;;  %v858_v61 = vadd.f32 %v855_v22, %v827_v44  ;;  %v854_v20 = vmul.f32 %v1290_v43, %v839_v26  ;;  %v1307_v22 = vld [vmem:[%s2419_s4 + $0x150] sm:$0xff] }
 0x1be   :  { %v866_v0 = vpop.permute.xlu1 %865  ;;  %v864_v46 = vpop.permute.xlu0 %863  ;;  %v846_v49 = vadd.f32 %v843_v35, %v815_v40  ;;  %v847_v6 = vadd.f32 %v844_v18, %v816_v38  ;;  %v856_v1 = vadd.f32 %v853_v19, %v825_v4  ;;  %v1305_v4 = vld [vmem:[%s2419_s4 + $0x80] sm:$0xff]  ;;  %v1311_v18 = vld [vmem:[%s2419_s4 + $0x98] sm:$0xff]  ;;  %v1313_v19 = vld [vmem:[%s2419_s4 + $0x168] sm:$0xff] }
 0x1bf   :  { %v869_v10 = vsel %vm89_vm2, %v864_v46, %v866_v0  ;;  %v1300_v46 = vld [vmem:[%s2419_s4 + $0x70] sm:$0xff]  ;;  %v857_v42 = vadd.f32 %v854_v20, %v826_v52  ;;  %v1312_v38 = vld [vmem:[%s2419_s4 + $0xa0] sm:$0xff]  ;;  %v1316_v20 = vld [vmem:[%s2419_s4 + $0xa8] sm:$0xff] }
 0x1c0   :  { %v874_v56 = vmul.f32 %v1292_v3, %v869_v10  ;;  %v884_v63 = vmul.f32 %v1295_v34, %v869_v10  ;;  %v1310_v34 = vld [vmem:[%s2419_s4 + $0x90] sm:$0xff] }
 0x1c2   :  { %v2220_v7 = vpop.permute.xlu1 %894  ;;  %v2222_v37 = vpop.permute.xlu0 %867  ;;  %v877_v55 = vadd.f32 %v874_v56, %v846_v49  ;;  %v887_v23 = vadd.f32 %v884_v63, %v856_v1  ;;  %v1317_v1 = vld [vmem:[%s2419_s4 + $0xb0] sm:$0xff] }
 0x1c3   :  { %v870_v9 = vsel %vm89_vm2, %v866_v0, %v2222_v37  ;;  %v876_v8 = vmul.f32 %v1294_v39, %v2222_v37  ;;  %v1298_v0 = vld [vmem:[%s2419_s4 + $0x60] sm:$0xff]  ;;  %v886_v48 = vmul.f32 %v1297_v53, %v2222_v37 }
 0x1c4   :  { %v875_v57 = vmul.f32 %v1293_v50, %v870_v9  ;;  %v885_v47 = vmul.f32 %v1296_v5, %v870_v9  ;;  %v1302_v37 = vld [vmem:[%s2419_s4 + $0x140] sm:$0xff] }
 0x1c5   :  { %v889_v30 = vadd.f32 %v886_v48, %v858_v61 }
 0x1c6   :  { %v899_v24 = vpop.permute.xlu1 %898  ;;  %v897_v36 = vpop.permute.xlu0 %896  ;;  %v888_v28 = vadd.f32 %v885_v47, %v857_v42 }
 0x1c7   :  { %v900_v54 = vsel %vm111_vm3, %v2220_v7, %v897_v36  ;;  %v901_v59 = vsel %vm111_vm3, %v897_v36, %v899_v24  ;;  %v907_v12 = vmul.f32 %v1300_v46, %v899_v24  ;;  %v1301_v7 = vld [vmem:[%s2419_s4 + $0x138] sm:$0xff]  ;;  %v917_v15 = vmul.f32 %v1303_v51, %v899_v24  ;;  %v1319_v51 = vld [vmem:[%s2419_s4 + $0x180] sm:$0xff] }
 0x1c8   :  { %v905_v16 = vmul.f32 %v1298_v0, %v900_v54  ;;  %v879_v36 = vadd.f32 %v876_v8, %v848_v14  ;;  %v906_v25 = vmul.f32 %v1299_v58, %v901_v59  ;;  %v878_v24 = vadd.f32 %v875_v57, %v847_v6  ;;  %v1314_v14 = vld [vmem:[%s2419_s4 + $0x170] sm:$0xff]  ;;  %v1318_v58 = vld [vmem:[%s2419_s4 + $0xb8] sm:$0xff] }
 0x1c9   :  { %v915_v29 = vmul.f32 %v1301_v7, %v900_v54  ;;  %v916_v26 = vmul.f32 %v1302_v37, %v901_v59  ;;  %v920_v45 = vadd.f32 %v917_v15, %v889_v30  ;;  %v1321_v59 = vld [vmem:[%s2419_s4 + $0x190] sm:$0xff] }
 0x1ca   :  { %v928_v11 = vpop.permute.xlu1 %927  ;;  %v926_v17 = vpop.permute.xlu0 %925  ;;  %v910_v33 = vadd.f32 %v907_v12, %v879_v36  ;;  %v908_v44 = vadd.f32 %v905_v16, %v877_v55  ;;  %v909_v39 = vadd.f32 %v906_v25, %v878_v24  ;;  %v1320_v16 = vld [vmem:[%s2419_s4 + $0x188] sm:$0xff]  ;;  %v1324_v30 = vld [vmem:[%s2419_s4 + $0xd0] sm:$0xff] }
 0x1cb   :  { %v931_v41 = vsel %vm133_vm4, %v926_v17, %v928_v11  ;;  %v918_v5 = vadd.f32 %v915_v29, %v887_v23  ;;  %v919_v56 = vadd.f32 %v916_v26, %v888_v28  ;;  %v1327_v29 = vld [vmem:[%s2419_s4 + $0x1a8] sm:$0xff]  ;;  %v1325_v26 = vld [vmem:[%s2419_s4 + $0x198] sm:$0xff] }
 0x1cc   :  { %v936_v40 = vmul.f32 %v1304_v21, %v931_v41  ;;  %v946_v17 = vmul.f32 %v1307_v22, %v931_v41  ;;  %v1322_v22 = vld [vmem:[%s2419_s4 + $0xc0] sm:$0xff] }
 0x1ce   :  { %v957_v60 = vpop.permute.xlu1 %956  ;;  %v930_v62 = vpop.permute.xlu0 %929  ;;  %v939_v63 = vadd.f32 %v936_v40, %v908_v44  ;;  %v1326_v40 = vld [vmem:[%s2419_s4 + $0x1a0] sm:$0xff] }
 0x1cf   :  { %v932_v43 = vsel %vm133_vm4, %v928_v11, %v930_v62  ;;  %v938_v3 = vmul.f32 %v1306_v27, %v930_v62  ;;  %v948_v35 = vmul.f32 %v1309_v2, %v930_v62  ;;  %v1315_v11 = vld [vmem:[%s2419_s4 + $0x178] sm:$0xff] }
 0x1d0   :  { %v937_v53 = vmul.f32 %v1305_v4, %v932_v43  ;;  %v947_v9 = vmul.f32 %v1308_v13, %v932_v43 }
 0x1d1   :  { %v941_v54 = vadd.f32 %v938_v3, %v910_v33  ;;  %v951_v62 = vadd.f32 %v948_v35, %v920_v45  ;;  %v1323_v33 = vld [vmem:[%s2419_s4 + $0xc8] sm:$0xff] }
 0x1d2   :  { %v961_v31 = vpop.permute.xlu1 %960  ;;  %v959_v32 = vpop.permute.xlu0 %958  ;;  %v940_v12 = vadd.f32 %v937_v53, %v909_v39  ;;  %v950_v7 = vadd.f32 %v947_v9, %v919_v56 }
 0x1d3   :  { %v962_v10 = vsel %vm155_vm5, %v957_v60, %v959_v32  ;;  %v963_v50 = vsel %vm155_vm5, %v959_v32, %v961_v31  ;;  %v969_v52 = vmul.f32 %v1312_v38, %v961_v31  ;;  %v979_v57 = vmul.f32 %v1315_v11, %v961_v31 }
 0x1d4   :  { %v967_v8 = vmul.f32 %v1310_v34, %v962_v10  ;;  %v968_v47 = vmul.f32 %v1311_v18, %v963_v50  ;;  %v977_v48 = vmul.f32 %v1313_v19, %v962_v10  ;;  %v949_v60 = vadd.f32 %v946_v17, %v918_v5 }
 0x1d5   :  { %v978_v49 = vmul.f32 %v1314_v14, %v963_v50  ;;  %v972_v42 = vadd.f32 %v969_v52, %v941_v54  ;;  %v982_v25 = vadd.f32 %v979_v57, %v951_v62 }
 0x1d6   :  { %v990_v61 = vpop.permute.xlu1 %989  ;;  %v988_v46 = vpop.permute.xlu0 %987  ;;  %v970_v41 = vadd.f32 %v967_v8, %v939_v63  ;;  %v971_v27 = vadd.f32 %v968_v47, %v940_v12  ;;  %v980_v24 = vadd.f32 %v977_v48, %v949_v60 }
 0x1d7   :  { %v993_v0 = vsel %vm177_vm6, %v988_v46, %v990_v61  ;;  %v981_v2 = vadd.f32 %v978_v49, %v950_v7 }
 0x1d8   :  { %v998_v6 = vmul.f32 %v1316_v20, %v993_v0  ;;  %v1008_v15 = vmul.f32 %v1319_v51, %v993_v0 }
 0x1da   :  { %v1019_v37 = vpop.permute.xlu1 %1018  ;;  %v992_v21 = vpop.permute.xlu0 %991  ;;  %v1001_v31 = vadd.f32 %v998_v6, %v970_v41  ;;  %v1011_v4 = vadd.f32 %v1008_v15, %v980_v24 }
 0x1db   :  { %v994_v55 = vsel %vm177_vm6, %v990_v61, %v992_v21  ;;  %v1000_v23 = vmul.f32 %v1318_v58, %v992_v21  ;;  %v1010_v36 = vmul.f32 %v1321_v59, %v992_v21 }
 0x1dc   :  { %v999_v28 = vmul.f32 %v1317_v1, %v994_v55  ;;  %v1009_v32 = vmul.f32 %v1320_v16, %v994_v55 }
 0x1dd   :  { %v1003_v43 = vadd.f32 %v1000_v23, %v972_v42  ;;  %v1013_v38 = vadd.f32 %v1010_v36, %v982_v25 }
 0x1de   :  { %v1002_v13 = vadd.f32 %v999_v28, %v971_v27  ;;  %v1023_v45 = vpop.permute.xlu1 %1022  ;;  %v1021_v44 = vpop.permute.xlu0 %1020  ;;  %v1012_v19 = vadd.f32 %v1009_v32, %v981_v2 }
 0x1df   :  { %v1031_v3 = vmul.f32 %v1324_v30, %v1023_v45  ;;  %v1041_v34 = vmul.f32 %v1327_v29, %v1023_v45  ;;  %v1024_v10 = vsel %vm199_vm7, %v1019_v37, %v1021_v44  ;;  %v1025_v39 = vsel %vm199_vm7, %v1021_v44, %v1023_v45 }
 0x1e0   :  { %v1029_v17 = vmul.f32 %v1322_v22, %v1024_v10  ;;  %v1030_v35 = vmul.f32 %v1323_v33, %v1025_v39  ;;  %v1039_v11 = vmul.f32 %v1325_v26, %v1024_v10  ;;  %v1040_v18 = vmul.f32 %v1326_v40, %v1025_v39  ;;  %v1142_v22 = vld [vmem:[%s2420_s5 + $0x8] sm:$0xf]  ;;  %v1141_v26 = vld [vmem:[%s2420_s5] sm:$0xff] }
 0x1e1   :  { %v1034_v50 = vadd.f32 %v1031_v3, %v1003_v43  ;;  %v1044_v5 = vadd.f32 %v1041_v34, %v1013_v38  ;;  %v1144_v3 = vcombine.high %v1141_v26, %v1141_v26 }
 0x1e2   :  { %v1032_v53 = vadd.f32 %v1029_v17, %v1001_v31  ;;  %v1033_v9 = vadd.f32 %v1030_v35, %v1002_v13  ;;  %v1042_v52 = vadd.f32 %v1039_v11, %v1011_v4  ;;  %v1043_v46 = vadd.f32 %v1040_v18, %v1012_v19 }
 0x1e3   :  { %v1050_v14 = vrot.slane %v1034_v50, 1  ;;  %v1059_v61 = vrot.slane %v1034_v50, 2  ;;  %v1080_v20 = vrot.slane %v1044_v5, 1  ;;  %v1068_v56 = vrot.slane %v1034_v50, 3 }
 0x1e4   :  { %v1089_v63 = vrot.slane %v1044_v5, 2  ;;  %v1048_v8 = vrot.slane %v1032_v53, 1  ;;  %v1049_v51 = vrot.slane %v1033_v9, 1  ;;  %v1098_v57 = vrot.slane %v1044_v5, 3 }
 0x1e5   :  { %v1056_v0 = vadd.f32 %v1050_v14, %v1034_v50  ;;  %v1086_v54 = vadd.f32 %v1080_v20, %v1044_v5  ;;  %v1057_v47 = vrot.slane %v1032_v53, 2  ;;  %v1058_v59 = vrot.slane %v1033_v9, 2 }
 0x1e6   :  { %v1054_v48 = vadd.f32 %v1048_v8, %v1032_v53  ;;  %v1055_v58 = vadd.f32 %v1049_v51, %v1033_v9  ;;  %v1066_v60 = vrot.slane %v1032_v53, 3  ;;  %v1078_v6 = vrot.slane %v1042_v52, 1 }
 0x1e7   :  { %v1065_v62 = vadd.f32 %v1059_v61, %v1056_v0  ;;  %v1095_v49 = vadd.f32 %v1089_v63, %v1086_v54  ;;  %v1079_v1 = vrot.slane %v1043_v46, 1  ;;  %v1067_v42 = vrot.slane %v1033_v9, 3 }
 0x1e8   :  { %v1063_v12 = vadd.f32 %v1057_v47, %v1054_v48  ;;  %v1064_v7 = vadd.f32 %v1058_v59, %v1055_v58  ;;  %v1087_v15 = vrot.slane %v1042_v52, 2  ;;  %v1084_v21 = vadd.f32 %v1078_v6, %v1042_v52 }
 0x1e9   :  { %v1074_v37 = vadd.f32 %v1068_v56, %v1065_v62  ;;  %v1104_v16 = vadd.f32 %v1098_v57, %v1095_v49  ;;  %v1085_v41 = vadd.f32 %v1079_v1, %v1043_v46  ;;  %v1088_v36 = vrot.slane %v1043_v46, 2 }
 0x1ea   :  { %v1072_v55 = vadd.f32 %v1066_v60, %v1063_v12  ;;  %v1073_v23 = vadd.f32 %v1067_v42, %v1064_v7  ;;  %v1093_v24 = vadd.f32 %v1087_v15, %v1084_v21  ;;  %v1096_v28 = vrot.slane %v1042_v52, 3 }
 0x1eb   :  { %v1110_v25 = vrot.slane %v1104_v16, 7  ;;  %v1119_v27 = vrot.slane %v1074_v37, 2  ;;  %v1094_v30 = vadd.f32 %v1088_v36, %v1085_v41  ;;  %v1097_v29 = vrot.slane %v1043_v46, 3 }
 0x1ec   :  { %v1125_v2 = vrot.slane %v1104_v16, 1  ;;  %v1102_v32 = vadd.f32 %v1096_v28, %v1093_v24  ;;  %v1117_v4 = vrot.slane %v1072_v55, 2  ;;  %v1118_v38 = vrot.slane %v1073_v23, 2 }
 0x1ed   :  { %v1132_v31 = vsel %vm1129_vm8, %v1074_v37, %v1110_v25  ;;  %v1103_v40 = vadd.f32 %v1097_v29, %v1094_v30 }
 0x1ee   :  { %v1136_v33 = vsel %vm1133_vm9, %v1132_v31, %v1119_v27  ;;  %v1108_v43 = vrot.slane %v1102_v32, 7  ;;  %v1123_v34 = vrot.slane %v1102_v32, 1 }
 0x1ef   :  { %v1140_v13 = vsel %vm1137_vm10, %v1136_v33, %v1125_v2  ;;  %v1109_v44 = vrot.slane %v1103_v40, 7  ;;  %v1124_v17 = vrot.slane %v1103_v40, 1 }
 0x1f0   :  { %v1148_v45 = vadd.f32 %v1142_v22, %v1140_v13  ;;  %v1130_v10 = vsel %vm1129_vm8, %v1072_v55, %v1108_v43 }
 0x1f1   :  { %v1131_v35 = vsel %vm1129_vm8, %v1073_v23, %v1109_v44  ;;  %v1134_v11 = vsel %vm1133_vm9, %v1130_v10, %v1117_v4 }
 0x1f2   :  { %v1151_v39 = vmax.f32 %v1148_v45, 0.0  ;;  %v1135_v18 = vsel %vm1133_vm9, %v1131_v35, %v1118_v38  ;;  %v1138_v19 = vsel %vm1137_vm10, %v1134_v11, %v1123_v34 }
 0x1f3   :  { %v1139_v50 = vsel %vm1137_vm10, %v1135_v18, %v1124_v17  ;;  %v1146_v5 = vadd.f32 %v1141_v26, %v1138_v19 }
 0x1f4   :  { %1158 = vst.msk [vmem:[%s2421_s6 + $0x8] sm:$0xf] %vm1157_vm11, %v1151_v39  ;;  %v1147_v53 = vadd.f32 %v1144_v3, %v1139_v50 }
 0x1f5   :  { %v1149_v9 = vmax.f32 %v1146_v5, 0.0 }
 0x1f6   :  { %v1150_v52 = vmax.f32 %v1147_v53, 0.0 }
 0x1f8   :  { %v1154_v14 = vcombine.low %v1149_v9, %v1150_v52 }
 0x1fa   :  { %1156 = vst [vmem:[%s2421_s6] sm:$0xff] %v1154_v14 }

</bundles_post_ra>
